<compile_context>
chip_gen: v7x
topology: tpu7x:2x2x1
jax: 0.10.0
libtpu: 0.0.40
codegen_flags: <defaults>
</compile_context>

<pallas_src>
import functools

import jax
import jax.numpy as jnp
import numpy as np
from jax.experimental import pallas as pl
from jax.experimental.pallas import tpu as pltpu


# ---------------------------------------------------------------------------
# Fused kernel: HGNN_conv + cos-sim + top-k + gather + VertexConv x2 +
#               EdgeConv + fc + log_softmax
# ---------------------------------------------------------------------------

def _dhgnn_kernel(kn, ks,
                  feats_ref, g_ref, ids_ref, sidx_ref, w0_ref, b0_ref,
                  wbd_ref, bkk_ref, gsum_ref, qw_ref, rmat_ref, bk1_ref,
                  ew1_ref, eb1_ref, ew2_ref, eb2_ref, fw_ref, fb_ref,
                  out_ref, rf_scr):
    f32 = jnp.float32
    N = g_ref.shape[0]
    n = ids_ref.shape[0]
    d = w0_ref.shape[1]
    T = 2                      # hyperedge types: [knn, structured]
    k = kn                     # kn == ks (asserted in the wrapper)

    # --- layer 0 (HGNN_conv): x = G @ relu(feats @ W0 + b0); dropout = identity
    h = jnp.dot(feats_ref[...], w0_ref[...], preferred_element_type=f32)
    h = jnp.maximum(h + b0_ref[...], 0.0)
    x = jnp.dot(g_ref[...], h, preferred_element_type=f32)                 # (N, d)

    # --- cosine similarity, only for the selected ids rows ------------------
    xn = x * jax.lax.rsqrt(jnp.maximum(jnp.sum(x * x, -1, keepdims=True), 1e-24))
    col = jax.lax.broadcasted_iota(jnp.int32, (n, N), 1)
    sel1h = (col == ids_ref[...]).astype(f32)                              # (n, N)
    xn_sel = jnp.dot(sel1h, xn, preferred_element_type=f32)                # (n, d)
    sim = jax.lax.dot_general(xn_sel, xn, (((1,), (1,)), ((), ())),
                              preferred_element_type=f32)                  # (n, N)

    # --- in-kernel top-kn: kn rounds of row-max + mask (smallest-idx ties) ---
    colf = col.astype(f32)
    cur = sim
    slots = []                                   # per-slot (n, 1) neighbour indices
    for _ in range(kn):
        mx = jnp.max(cur, axis=-1, keepdims=True)
        sel = jnp.min(jnp.where(cur >= mx, colf, jnp.float32(N)),
                      axis=-1, keepdims=True).astype(jnp.int32)
        slots.append(sel)
        cur = jnp.where(col == sel, jnp.float32(-1e30), cur)

    sidx = sidx_ref[...]                         # (n, ks) structured neighbours
    for j in range(ks):
        slots.append(sidx[:, j:j + 1])

    # --- gather all T*k neighbour rows with ONE one-hot MXU matmul ----------
    oh = jnp.concatenate([(col == s).astype(f32) for s in slots], axis=0)  # (T*k*n, N)
    rf_rows = jnp.dot(oh, x, preferred_element_type=f32)                   # (T*k*n, d)

    # --- restage into a lane-dense (n, T*k*d) slab in VMEM scratch ----------
    for s in range(T * k):
        rf_scr[:, s * d:(s + 1) * d] = rf_rows[s * n:(s + 1) * n, :]
    rf = rf_scr[...]                                                       # (n, T*k*d)

    # --- VertexConv.Transform: convKK = ONE (n,T*k*d)@(T*k*d,T*k*k) matmul ---
    m = jnp.dot(rf, wbd_ref[...], preferred_element_type=f32) + bkk_ref[...]
    # per-(type, neighbour) softmax over j: a per-row shift is exact for softmax,
    # group sums come from a precomputed 0/1 matrix (stays lane-dense, no reshape)
    e = jnp.exp(m - jnp.max(m, axis=-1, keepdims=True))
    gs = jnp.dot(e, gsum_ref[...], preferred_element_type=f32)
    p = e * pl.reciprocal(gs, approx=True)                                 # (n, T*k*k)

    # --- convK1 folded by linearity into precomputed spread / pooling mats ---
    qwide = jnp.dot(p, qw_ref[...], preferred_element_type=f32)            # (n, T*k*d)
    pooled = jnp.dot(qwide * rf, rmat_ref[...],
                     preferred_element_type=f32) + bk1_ref[...]            # (n, T*d)
    p0 = pooled[:, 0:d]            # knn hyperedge features        (n, d)
    p1 = pooled[:, d:2 * d]        # structured hyperedge features (n, d)

    # --- EdgeConv: both hyperedge types through one MLP matmul --------------
    ecin = jnp.concatenate([p0, p1], axis=0)                               # (T*n, d)
    hh = jnp.maximum(jnp.dot(ecin, ew1_ref[...], preferred_element_type=f32)
                     + eb1_ref[...], 0.0)
    sc = jnp.sum(hh * ew2_ref[...], axis=-1, keepdims=True) + eb2_ref[0]   # (T*n, 1)
    att = jnp.concatenate([sc[0:n, :], sc[n:2 * n, :]], axis=-1)           # (n, T)
    att = att - jnp.max(att, axis=-1, keepdims=True)
    ea = jnp.exp(att)
    w = ea * pl.reciprocal(jnp.sum(ea, axis=-1, keepdims=True), approx=True)
    agg = w[:, 0:1] * p0 + w[:, 1:2] * p1                                  # (n, d)

    # --- fc + LogSoftmax ------------------------------------------------------
    z = jnp.dot(agg, fw_ref[...], preferred_element_type=f32) + fb_ref[...]
    z = z - jnp.max(z, axis=-1, keepdims=True)
    out_ref[...] = z - jnp.log(jnp.sum(jnp.exp(z), axis=-1, keepdims=True))


# ---------------------------------------------------------------------------
# Wrapper: single grid-less pallas_call, whole arrays resident in VMEM
# ---------------------------------------------------------------------------

def _vmem():
    return pl.BlockSpec(memory_space=pltpu.MemorySpace.VMEM)


def _smem():
    return pl.BlockSpec(memory_space=pltpu.MemorySpace.SMEM)


def dhgnn_forward(feats, G, ids_col, sidx, pp, *, kn, ks):
    # TODO(synk): for large N this should get a "parallel" row-block grid
    # (v7x megacore) and block-wise sim/top-k; at toy shapes it is launch-bound.
    n = ids_col.shape[0]
    d = pp['w0'].shape[1]
    n_cat = pp['fw'].shape[1]
    args = (feats, G, ids_col, sidx, pp['w0'], pp['b0'], pp['wbd'], pp['bkk'],
            pp['gsum'], pp['qw'], pp['rmat'], pp['bk1w'], pp['ew1'], pp['eb1'],
            pp['ew2'], pp['eb2'], pp['fw'], pp['fb'])
    in_specs = [_vmem()] * 15 + [_smem(), _vmem(), _vmem()]   # eb2 scalar -> SMEM
    return pl.pallas_call(
        functools.partial(_dhgnn_kernel, kn, ks),
        out_shape=jax.ShapeDtypeStruct((n, n_cat), jnp.float32),
        in_specs=in_specs,
        out_specs=_vmem(),
        scratch_shapes=[pltpu.VMEM((n, 2 * kn * d), jnp.float32)],
        compiler_params=pltpu.CompilerParams(vmem_limit_bytes=32 * 1024 * 1024),
    )(*args)


# ---------------------------------------------------------------------------
# One-time parameter preprocessing (all weight re-layouts hoisted out of forward)
# ---------------------------------------------------------------------------

def preprocess_params(w0, b0, vc_n, vc_s, ew1, eb1, ew2, eb2, fw, fb,
                      ids, edge_idx, kn, ks):
    assert kn == ks, "uniform neighbour count assumed; pad the smaller branch"
    T, k = 2, kn
    d = w0.shape[1]
    vcs = (vc_n, vc_s)                     # hyperedge-type order: [knn, struct]

    # block-diagonal convKK weight: (T*k*d, T*k*k); Conv1d(k, k*k, d) weight (k*k,k,d)
    wbd = np.zeros((T * k * d, T * k * k), np.float32)
    for t, vc in enumerate(vcs):
        blk = np.asarray(vc['wkk']).transpose(1, 2, 0).reshape(k * d, k * k)
        wbd[t * k * d:(t + 1) * k * d, t * k * k:(t + 1) * k * k] = blk
    bkk = np.concatenate([np.asarray(vc['bkk']) for vc in vcs]).reshape(1, T * k * k)

    # group-sum matrix for the per-(t, i) softmax denominator (groups of k lanes)
    cidx = np.arange(T * k * k)
    gsum = (cidx[:, None] // k == cidx[None, :] // k).astype(np.float32)

    # convK1 weight folded into a "spread" matrix (p -> per-neighbour scalar, lane-wide)
    # and the neighbour-sum pooling matrix; convK1 bias folded into a (1, T*d) vector.
    qw = np.zeros((T * k * k, T * k * d), np.float32)
    rmat = np.zeros((T * k * d, T * d), np.float32)
    eye = np.eye(d, dtype=np.float32)
    for t, vc in enumerate(vcs):
        wk1 = np.asarray(vc['wk1'])
        for i in range(k):
            for j in range(k):
                qw[t * k * k + i * k + j,
                   (t * k + j) * d:(t * k + j + 1) * d] = wk1[i]
        for j in range(k):
            rmat[(t * k + j) * d:(t * k + j + 1) * d, t * d:(t + 1) * d] = eye
    bk1w = np.concatenate(
        [np.full((d,), float(np.asarray(vc['bk1'])), np.float32) for vc in vcs]
    ).reshape(1, T * d)

    pp = dict(
        w0=w0, b0=b0.reshape(1, -1),
        wbd=jnp.asarray(wbd), bkk=jnp.asarray(bkk), gsum=jnp.asarray(gsum),
        qw=jnp.asarray(qw), rmat=jnp.asarray(rmat), bk1w=jnp.asarray(bk1w),
        ew1=ew1, eb1=eb1.reshape(1, -1), ew2=ew2.reshape(1, -1),
        eb2=eb2.reshape(1).astype(jnp.float32),
        fw=fw, fb=fb.reshape(1, -1),
    )
    ids_col = ids.reshape(-1, 1).astype(jnp.int32)
    # TODO(synk): random sample_ids() of structured neighbours replaced by a
    # deterministic fixed-size edge_dict selection (each node has exactly ks nbrs).
    sidx = edge_idx[ids].astype(jnp.int32)
    return pp, ids_col, sidx


# ---------------------------------------------------------------------------
# Main
# ---------------------------------------------------------------------------

if __name__ == "__main__":
    key = jax.random.PRNGKey(0)
    keys = jax.random.split(key, 12)

    # module hyper-parameters (small): layer_spec=[32], n_layers=2
    N, dim_feat, h0, n_cat = 32, 16, 32, 8
    kn = ks = 4                               # k_nearest / k_structured
    hidden = h0 // 4                          # EdgeConv hidden = dim_in // 4
    # wu_knn = wu_struct = 0, wu_kmeans = 100, ite = 1 -> knn + struct active;
    # TODO(synk): k-means cluster hyperedges use sklearn KMeans (no Pallas
    # equivalent); skipped via the module's own warm-up gating (ite < wu_kmeans).

    feats = jax.random.normal(keys[0], (N, dim_feat), jnp.float32)
    G = jax.random.uniform(keys[1], (N, N), jnp.float32)
    G = G / jnp.sum(G, axis=1, keepdims=True)            # hypergraph propagation matrix
    ids = jnp.arange(0, N, 2, dtype=jnp.int32)           # 16 selected nodes
    edge_idx = ((jnp.arange(N)[:, None] + jnp.arange(1, ks + 1)[None, :]) % N
                ).astype(jnp.int32)                      # edge_dict (N, ks)

    def lin(k_, i, o, scale=0.1):
        kw, kb = jax.random.split(k_)
        return (scale * jax.random.normal(kw, (i, o), jnp.float32),
                scale * jax.random.normal(kb, (o,), jnp.float32))

    def vc_init(k_, kk, dd, scale=0.1):                  # torch layouts
        k1, k2, k3, k4 = jax.random.split(k_, 4)
        return dict(
            wkk=scale * jax.random.normal(k1, (kk * kk, kk, dd), jnp.float32),  # Conv1d(k, k*k, d)
            bkk=scale * jax.random.normal(k2, (kk * kk,), jnp.float32),
            wk1=scale * jax.random.normal(k3, (kk,), jnp.float32),              # Conv1d(k, 1, 1)
            bk1=scale * jax.random.normal(k4, (), jnp.float32))

    w0, b0 = lin(keys[2], dim_feat, h0)                  # layer 0: HGNN_conv fc
    vc_n = vc_init(keys[3], kn, h0)                      # VertexConv (knn)
    vc_s = vc_init(keys[4], ks, h0)                      # VertexConv (structured)
    ew1, eb1 = lin(keys[5], h0, hidden)                  # EdgeConv MLP
    ew2 = 0.1 * jax.random.normal(keys[6], (hidden,), jnp.float32)
    eb2 = 0.1 * jax.random.normal(keys[7], (1,), jnp.float32)
    fw, fb = lin(keys[8], h0, n_cat)                     # final fc

    pp, ids_col, sidx = preprocess_params(w0, b0, vc_n, vc_s, ew1, eb1, ew2, eb2,
                                          fw, fb, ids, edge_idx, kn, ks)

    forward = jax.jit(functools.partial(dhgnn_forward, kn=kn, ks=ks))
    out = forward(feats, G, ids_col, sidx, pp)           # (16, 8) log-probs
    out = jax.block_until_ready(out)
    assert out.shape == (ids.shape[0], n_cat)
    assert bool(jnp.all(jnp.isfinite(out)))
    print("KERNEL_OK")
</pallas_src>

<mosaic_0001>
module attributes {stable_mosaic.version = 11 : i64} {
  func.func @_dhgnn_kernel(%arg0: memref<32x16xf32, #tpu.memory_space<vmem>>, %arg1: memref<32x32xf32, #tpu.memory_space<vmem>>, %arg2: memref<16x1xi32, #tpu.memory_space<vmem>>, %arg3: memref<16x4xi32, #tpu.memory_space<vmem>>, %arg4: memref<16x32xf32, #tpu.memory_space<vmem>>, %arg5: memref<1x32xf32, #tpu.memory_space<vmem>>, %arg6: memref<256x32xf32, #tpu.memory_space<vmem>>, %arg7: memref<1x32xf32, #tpu.memory_space<vmem>>, %arg8: memref<32x32xf32, #tpu.memory_space<vmem>>, %arg9: memref<32x256xf32, #tpu.memory_space<vmem>>, %arg10: memref<256x64xf32, #tpu.memory_space<vmem>>, %arg11: memref<1x64xf32, #tpu.memory_space<vmem>>, %arg12: memref<32x8xf32, #tpu.memory_space<vmem>>, %arg13: memref<1x8xf32, #tpu.memory_space<vmem>>, %arg14: memref<1x8xf32, #tpu.memory_space<vmem>>, %arg15: memref<1xf32, #tpu.memory_space<smem>>, %arg16: memref<32x8xf32, #tpu.memory_space<vmem>>, %arg17: memref<1x8xf32, #tpu.memory_space<vmem>>, %arg18: memref<16x8xf32, #tpu.memory_space<vmem>>, %arg19: memref<16x256xf32, #tpu.memory_space<vmem>>) attributes {dimension_semantics = [], scalar_prefetch = 0 : i64, scratch_operands = 1 : i64, tpu.core_type = #tpu.core_type<tc>} {
    %c0 = arith.constant 0 : index
    %c0_0 = arith.constant 0 : index
    %0 = vector.load %arg0[%c0, %c0_0] : memref<32x16xf32, #tpu.memory_space<vmem>>, vector<32x16xf32>
    %c0_1 = arith.constant 0 : index
    %c0_2 = arith.constant 0 : index
    %1 = vector.load %arg4[%c0_1, %c0_2] : memref<16x32xf32, #tpu.memory_space<vmem>>, vector<16x32xf32>
    %cst = arith.constant dense<0.000000e+00> : vector<32x32xf32>
    %2 = tpu.matmul %0, %1, %cst {dimension_numbers = #tpu.dot_dimension_numbers<[1], [0], [0], [1], [0, 0, 1, 1], [], []>} : vector<32x16xf32>, vector<16x32xf32>, vector<32x32xf32> -> vector<32x32xf32>
    %c0_3 = arith.constant 0 : index
    %c0_4 = arith.constant 0 : index
    %3 = vector.load %arg5[%c0_3, %c0_4] : memref<1x32xf32, #tpu.memory_space<vmem>>, vector<1x32xf32>
    %4 = vector.broadcast %3 : vector<1x32xf32> to vector<32x32xf32>
    %5 = arith.addf %2, %4 : vector<32x32xf32>
    %cst_5 = arith.constant 0.000000e+00 : f32
    %6 = vector.broadcast %cst_5 : f32 to vector<32x32xf32>
    %7 = arith.maximumf %5, %6 : vector<32x32xf32>
    %c0_6 = arith.constant 0 : index
    %c0_7 = arith.constant 0 : index
    %8 = vector.load %arg1[%c0_6, %c0_7] : memref<32x32xf32, #tpu.memory_space<vmem>>, vector<32x32xf32>
    %cst_8 = arith.constant dense<0.000000e+00> : vector<32x32xf32>
    %9 = tpu.matmul %8, %7, %cst_8 {dimension_numbers = #tpu.dot_dimension_numbers<[1], [0], [0], [1], [0, 0, 1, 1], [], []>} : vector<32x32xf32>, vector<32x32xf32>, vector<32x32xf32> -> vector<32x32xf32>
    %10 = arith.mulf %9, %9 : vector<32x32xf32>
    %cst_9 = arith.constant dense<0.000000e+00> : vector<32xf32>
    %11 = vector.multi_reduction <add>, %10, %cst_9 [1] : vector<32x32xf32> to vector<32xf32>
    %12 = vector.shape_cast %11 : vector<32xf32> to vector<32x1xf32>
    %cst_10 = arith.constant 1.000000e-24 : f32
    %13 = vector.broadcast %cst_10 : f32 to vector<32x1xf32>
    %14 = arith.maximumf %12, %13 : vector<32x1xf32>
    %15 = math.rsqrt %14 : vector<32x1xf32>
    %16 = vector.broadcast %15 : vector<32x1xf32> to vector<32x32xf32>
    %17 = arith.mulf %9, %16 : vector<32x32xf32>
    %18 = tpu.iota {dimensions = array<i32: 1>} : vector<16x32xi32>
    %c0_11 = arith.constant 0 : index
    %c0_12 = arith.constant 0 : index
    %19 = vector.load %arg2[%c0_11, %c0_12] : memref<16x1xi32, #tpu.memory_space<vmem>>, vector<16x1xi32>
    %20 = vector.broadcast %19 : vector<16x1xi32> to vector<16x32xi32>
    %21 = arith.cmpi eq, %18, %20 : vector<16x32xi32>
    %22 = arith.extui %21 : vector<16x32xi1> to vector<16x32xi32>
    %23 = arith.sitofp %22 : vector<16x32xi32> to vector<16x32xf32>
    %cst_13 = arith.constant dense<0.000000e+00> : vector<16x32xf32>
    %24 = tpu.matmul %23, %17, %cst_13 {dimension_numbers = #tpu.dot_dimension_numbers<[1], [0], [0], [1], [0, 0, 1, 1], [], []>} : vector<16x32xf32>, vector<32x32xf32>, vector<16x32xf32> -> vector<16x32xf32>
    %cst_14 = arith.constant dense<0.000000e+00> : vector<16x32xf32>
    %25 = tpu.matmul %24, %17, %cst_14 {dimension_numbers = #tpu.dot_dimension_numbers<[1], [1], [0], [0], [0, 0, 1, 0], [], []>} : vector<16x32xf32>, vector<32x32xf32>, vector<16x32xf32> -> vector<16x32xf32>
    %26 = arith.sitofp %18 : vector<16x32xi32> to vector<16x32xf32>
    %cst_15 = arith.constant dense<0xFF800000> : vector<16xf32>
    %27 = vector.multi_reduction <maximumf>, %25, %cst_15 [1] : vector<16x32xf32> to vector<16xf32>
    %28 = vector.shape_cast %27 : vector<16xf32> to vector<16x1xf32>
    %29 = vector.broadcast %28 : vector<16x1xf32> to vector<16x32xf32>
    %30 = arith.cmpf oge, %25, %29 : vector<16x32xf32>
    %cst_16 = arith.constant 3.200000e+01 : f32
    %31 = vector.broadcast %cst_16 : f32 to vector<16x32xf32>
    %32 = arith.select %30, %26, %31 : vector<16x32xi1>, vector<16x32xf32>
    %cst_17 = arith.constant dense<0x7F800000> : vector<16xf32>
    %33 = vector.multi_reduction <minimumf>, %32, %cst_17 [1] : vector<16x32xf32> to vector<16xf32>
    %34 = vector.shape_cast %33 : vector<16xf32> to vector<16x1xf32>
    %35 = arith.fptosi %34 : vector<16x1xf32> to vector<16x1xi32>
    %36 = vector.broadcast %35 : vector<16x1xi32> to vector<16x32xi32>
    %37 = arith.cmpi eq, %18, %36 : vector<16x32xi32>
    %cst_18 = arith.constant -1.000000e+30 : f32
    %38 = vector.broadcast %cst_18 : f32 to vector<16x32xf32>
    %39 = arith.select %37, %38, %25 : vector<16x32xi1>, vector<16x32xf32>
    %cst_19 = arith.constant dense<0xFF800000> : vector<16xf32>
    %40 = vector.multi_reduction <maximumf>, %39, %cst_19 [1] : vector<16x32xf32> to vector<16xf32>
    %41 = vector.shape_cast %40 : vector<16xf32> to vector<16x1xf32>
    %42 = vector.broadcast %41 : vector<16x1xf32> to vector<16x32xf32>
    %43 = arith.cmpf oge, %39, %42 : vector<16x32xf32>
    %cst_20 = arith.constant 3.200000e+01 : f32
    %44 = vector.broadcast %cst_20 : f32 to vector<16x32xf32>
    %45 = arith.select %43, %26, %44 : vector<16x32xi1>, vector<16x32xf32>
    %cst_21 = arith.constant dense<0x7F800000> : vector<16xf32>
    %46 = vector.multi_reduction <minimumf>, %45, %cst_21 [1] : vector<16x32xf32> to vector<16xf32>
    %47 = vector.shape_cast %46 : vector<16xf32> to vector<16x1xf32>
    %48 = arith.fptosi %47 : vector<16x1xf32> to vector<16x1xi32>
    %49 = vector.broadcast %48 : vector<16x1xi32> to vector<16x32xi32>
    %50 = arith.cmpi eq, %18, %49 : vector<16x32xi32>
    %cst_22 = arith.constant -1.000000e+30 : f32
    %51 = vector.broadcast %cst_22 : f32 to vector<16x32xf32>
    %52 = arith.select %50, %51, %39 : vector<16x32xi1>, vector<16x32xf32>
    %cst_23 = arith.constant dense<0xFF800000> : vector<16xf32>
    %53 = vector.multi_reduction <maximumf>, %52, %cst_23 [1] : vector<16x32xf32> to vector<16xf32>
    %54 = vector.shape_cast %53 : vector<16xf32> to vector<16x1xf32>
    %55 = vector.broadcast %54 : vector<16x1xf32> to vector<16x32xf32>
    %56 = arith.cmpf oge, %52, %55 : vector<16x32xf32>
    %cst_24 = arith.constant 3.200000e+01 : f32
    %57 = vector.broadcast %cst_24 : f32 to vector<16x32xf32>
    %58 = arith.select %56, %26, %57 : vector<16x32xi1>, vector<16x32xf32>
    %cst_25 = arith.constant dense<0x7F800000> : vector<16xf32>
    %59 = vector.multi_reduction <minimumf>, %58, %cst_25 [1] : vector<16x32xf32> to vector<16xf32>
    %60 = vector.shape_cast %59 : vector<16xf32> to vector<16x1xf32>
    %61 = arith.fptosi %60 : vector<16x1xf32> to vector<16x1xi32>
    %62 = vector.broadcast %61 : vector<16x1xi32> to vector<16x32xi32>
    %63 = arith.cmpi eq, %18, %62 : vector<16x32xi32>
    %cst_26 = arith.constant -1.000000e+30 : f32
    %64 = vector.broadcast %cst_26 : f32 to vector<16x32xf32>
    %65 = arith.select %63, %64, %52 : vector<16x32xi1>, vector<16x32xf32>
    %cst_27 = arith.constant dense<0xFF800000> : vector<16xf32>
    %66 = vector.multi_reduction <maximumf>, %65, %cst_27 [1] : vector<16x32xf32> to vector<16xf32>
    %67 = vector.shape_cast %66 : vector<16xf32> to vector<16x1xf32>
    %68 = vector.broadcast %67 : vector<16x1xf32> to vector<16x32xf32>
    %69 = arith.cmpf oge, %65, %68 : vector<16x32xf32>
    %cst_28 = arith.constant 3.200000e+01 : f32
    %70 = vector.broadcast %cst_28 : f32 to vector<16x32xf32>
    %71 = arith.select %69, %26, %70 : vector<16x32xi1>, vector<16x32xf32>
    %cst_29 = arith.constant dense<0x7F800000> : vector<16xf32>
    %72 = vector.multi_reduction <minimumf>, %71, %cst_29 [1] : vector<16x32xf32> to vector<16xf32>
    %73 = vector.shape_cast %72 : vector<16xf32> to vector<16x1xf32>
    %74 = arith.fptosi %73 : vector<16x1xf32> to vector<16x1xi32>
    %c0_30 = arith.constant 0 : index
    %c0_31 = arith.constant 0 : index
    %75 = vector.load %arg3[%c0_30, %c0_31] : memref<16x4xi32, #tpu.memory_space<vmem>>, vector<16x4xi32>
    %76 = vector.extract_strided_slice %75 {offsets = [0, 0], sizes = [16, 1], strides = [1, 1]} : vector<16x4xi32> to vector<16x1xi32>
    %77 = vector.extract_strided_slice %75 {offsets = [0, 1], sizes = [16, 1], strides = [1, 1]} : vector<16x4xi32> to vector<16x1xi32>
    %78 = vector.extract_strided_slice %75 {offsets = [0, 2], sizes = [16, 1], strides = [1, 1]} : vector<16x4xi32> to vector<16x1xi32>
    %79 = vector.extract_strided_slice %75 {offsets = [0, 3], sizes = [16, 1], strides = [1, 1]} : vector<16x4xi32> to vector<16x1xi32>
    %80 = vector.broadcast %35 : vector<16x1xi32> to vector<16x32xi32>
    %81 = arith.cmpi eq, %18, %80 : vector<16x32xi32>
    %82 = arith.extui %81 : vector<16x32xi1> to vector<16x32xi32>
    %83 = arith.sitofp %82 : vector<16x32xi32> to vector<16x32xf32>
    %84 = vector.broadcast %48 : vector<16x1xi32> to vector<16x32xi32>
    %85 = arith.cmpi eq, %18, %84 : vector<16x32xi32>
    %86 = arith.extui %85 : vector<16x32xi1> to vector<16x32xi32>
    %87 = arith.sitofp %86 : vector<16x32xi32> to vector<16x32xf32>
    %88 = vector.broadcast %61 : vector<16x1xi32> to vector<16x32xi32>
    %89 = arith.cmpi eq, %18, %88 : vector<16x32xi32>
    %90 = arith.extui %89 : vector<16x32xi1> to vector<16x32xi32>
    %91 = arith.sitofp %90 : vector<16x32xi32> to vector<16x32xf32>
    %92 = vector.broadcast %74 : vector<16x1xi32> to vector<16x32xi32>
    %93 = arith.cmpi eq, %18, %92 : vector<16x32xi32>
    %94 = arith.extui %93 : vector<16x32xi1> to vector<16x32xi32>
    %95 = arith.sitofp %94 : vector<16x32xi32> to vector<16x32xf32>
    %96 = vector.broadcast %76 : vector<16x1xi32> to vector<16x32xi32>
    %97 = arith.cmpi eq, %18, %96 : vector<16x32xi32>
    %98 = arith.extui %97 : vector<16x32xi1> to vector<16x32xi32>
    %99 = arith.sitofp %98 : vector<16x32xi32> to vector<16x32xf32>
    %100 = vector.broadcast %77 : vector<16x1xi32> to vector<16x32xi32>
    %101 = arith.cmpi eq, %18, %100 : vector<16x32xi32>
    %102 = arith.extui %101 : vector<16x32xi1> to vector<16x32xi32>
    %103 = arith.sitofp %102 : vector<16x32xi32> to vector<16x32xf32>
    %104 = vector.broadcast %78 : vector<16x1xi32> to vector<16x32xi32>
    %105 = arith.cmpi eq, %18, %104 : vector<16x32xi32>
    %106 = arith.extui %105 : vector<16x32xi1> to vector<16x32xi32>
    %107 = arith.sitofp %106 : vector<16x32xi32> to vector<16x32xf32>
    %108 = vector.broadcast %79 : vector<16x1xi32> to vector<16x32xi32>
    %109 = arith.cmpi eq, %18, %108 : vector<16x32xi32>
    %110 = arith.extui %109 : vector<16x32xi1> to vector<16x32xi32>
    %111 = arith.sitofp %110 : vector<16x32xi32> to vector<16x32xf32>
    %112 = tpu.concatenate %83, %87, %91, %95, %99, %103, %107, %111 in 0 : vector<16x32xf32>, vector<16x32xf32>, vector<16x32xf32>, vector<16x32xf32>, vector<16x32xf32>, vector<16x32xf32>, vector<16x32xf32>, vector<16x32xf32> -> vector<128x32xf32>
    %cst_32 = arith.constant dense<0.000000e+00> : vector<128x32xf32>
    %113 = tpu.matmul %112, %9, %cst_32 {dimension_numbers = #tpu.dot_dimension_numbers<[1], [0], [0], [1], [0, 0, 1, 1], [], []>} : vector<128x32xf32>, vector<32x32xf32>, vector<128x32xf32> -> vector<128x32xf32>
    %114 = vector.extract_strided_slice %113 {offsets = [0, 0], sizes = [16, 32], strides = [1, 1]} : vector<128x32xf32> to vector<16x32xf32>
    %c0_33 = arith.constant 0 : index
    %c0_34 = arith.constant 0 : index
    %115 = vector.load %arg19[%c0_33, %c0_34] : memref<16x256xf32, #tpu.memory_space<vmem>>, vector<16x32xf32>
    tpu.vector_store %arg19[%c0_33, %c0_34], %114 {strides = array<i32>} : memref<16x256xf32, #tpu.memory_space<vmem>>, vector<16x32xf32>,
    %116 = vector.extract_strided_slice %113 {offsets = [16, 0], sizes = [16, 32], strides = [1, 1]} : vector<128x32xf32> to vector<16x32xf32>
    %c0_35 = arith.constant 0 : index
    %c32 = arith.constant 32 : index
    %117 = vector.load %arg19[%c0_35, %c32] : memref<16x256xf32, #tpu.memory_space<vmem>>, vector<16x32xf32>
    tpu.vector_store %arg19[%c0_35, %c32], %116 {strides = array<i32>} : memref<16x256xf32, #tpu.memory_space<vmem>>, vector<16x32xf32>,
    %118 = vector.extract_strided_slice %113 {offsets = [32, 0], sizes = [16, 32], strides = [1, 1]} : vector<128x32xf32> to vector<16x32xf32>
    %c0_36 = arith.constant 0 : index
    %c64 = arith.constant 64 : index
    %119 = vector.load %arg19[%c0_36, %c64] : memref<16x256xf32, #tpu.memory_space<vmem>>, vector<16x32xf32>
    tpu.vector_store %arg19[%c0_36, %c64], %118 {strides = array<i32>} : memref<16x256xf32, #tpu.memory_space<vmem>>, vector<16x32xf32>,
    %120 = vector.extract_strided_slice %113 {offsets = [48, 0], sizes = [16, 32], strides = [1, 1]} : vector<128x32xf32> to vector<16x32xf32>
    %c0_37 = arith.constant 0 : index
    %c96 = arith.constant 96 : index
    %121 = vector.load %arg19[%c0_37, %c96] : memref<16x256xf32, #tpu.memory_space<vmem>>, vector<16x32xf32>
    tpu.vector_store %arg19[%c0_37, %c96], %120 {strides = array<i32>} : memref<16x256xf32, #tpu.memory_space<vmem>>, vector<16x32xf32>,
    %122 = vector.extract_strided_slice %113 {offsets = [64, 0], sizes = [16, 32], strides = [1, 1]} : vector<128x32xf32> to vector<16x32xf32>
    %c0_38 = arith.constant 0 : index
    %c128 = arith.constant 128 : index
    %123 = vector.load %arg19[%c0_38, %c128] : memref<16x256xf32, #tpu.memory_space<vmem>>, vector<16x32xf32>
    tpu.vector_store %arg19[%c0_38, %c128], %122 {strides = array<i32>} : memref<16x256xf32, #tpu.memory_space<vmem>>, vector<16x32xf32>,
    %124 = vector.extract_strided_slice %113 {offsets = [80, 0], sizes = [16, 32], strides = [1, 1]} : vector<128x32xf32> to vector<16x32xf32>
    %c0_39 = arith.constant 0 : index
    %c160 = arith.constant 160 : index
    %125 = vector.load %arg19[%c0_39, %c160] : memref<16x256xf32, #tpu.memory_space<vmem>>, vector<16x32xf32>
    tpu.vector_store %arg19[%c0_39, %c160], %124 {strides = array<i32>} : memref<16x256xf32, #tpu.memory_space<vmem>>, vector<16x32xf32>,
    %126 = vector.extract_strided_slice %113 {offsets = [96, 0], sizes = [16, 32], strides = [1, 1]} : vector<128x32xf32> to vector<16x32xf32>
    %c0_40 = arith.constant 0 : index
    %c192 = arith.constant 192 : index
    %127 = vector.load %arg19[%c0_40, %c192] : memref<16x256xf32, #tpu.memory_space<vmem>>, vector<16x32xf32>
    tpu.vector_store %arg19[%c0_40, %c192], %126 {strides = array<i32>} : memref<16x256xf32, #tpu.memory_space<vmem>>, vector<16x32xf32>,
    %128 = vector.extract_strided_slice %113 {offsets = [112, 0], sizes = [16, 32], strides = [1, 1]} : vector<128x32xf32> to vector<16x32xf32>
    %c0_41 = arith.constant 0 : index
    %c224 = arith.constant 224 : index
    %129 = vector.load %arg19[%c0_41, %c224] : memref<16x256xf32, #tpu.memory_space<vmem>>, vector<16x32xf32>
    tpu.vector_store %arg19[%c0_41, %c224], %128 {strides = array<i32>} : memref<16x256xf32, #tpu.memory_space<vmem>>, vector<16x32xf32>,
    %c0_42 = arith.constant 0 : index
    %c0_43 = arith.constant 0 : index
    %130 = vector.load %arg19[%c0_42, %c0_43] : memref<16x256xf32, #tpu.memory_space<vmem>>, vector<16x256xf32>
    %c0_44 = arith.constant 0 : index
    %c0_45 = arith.constant 0 : index
    %131 = vector.load %arg6[%c0_44, %c0_45] : memref<256x32xf32, #tpu.memory_space<vmem>>, vector<256x32xf32>
    %cst_46 = arith.constant dense<0.000000e+00> : vector<16x32xf32>
    %132 = tpu.matmul %130, %131, %cst_46 {dimension_numbers = #tpu.dot_dimension_numbers<[1], [0], [0], [1], [0, 0, 1, 1], [], []>} : vector<16x256xf32>, vector<256x32xf32>, vector<16x32xf32> -> vector<16x32xf32>
    %c0_47 = arith.constant 0 : index
    %c0_48 = arith.constant 0 : index
    %133 = vector.load %arg7[%c0_47, %c0_48] : memref<1x32xf32, #tpu.memory_space<vmem>>, vector<1x32xf32>
    %134 = vector.broadcast %133 : vector<1x32xf32> to vector<16x32xf32>
    %135 = arith.addf %132, %134 : vector<16x32xf32>
    %cst_49 = arith.constant dense<0xFF800000> : vector<16xf32>
    %136 = vector.multi_reduction <maximumf>, %135, %cst_49 [1] : vector<16x32xf32> to vector<16xf32>
    %137 = vector.shape_cast %136 : vector<16xf32> to vector<16x1xf32>
    %138 = vector.broadcast %137 : vector<16x1xf32> to vector<16x32xf32>
    %139 = arith.subf %135, %138 : vector<16x32xf32>
    %140 = math.exp %139 : vector<16x32xf32>
    %c0_50 = arith.constant 0 : index
    %c0_51 = arith.constant 0 : index
    %141 = vector.load %arg8[%c0_50, %c0_51] : memref<32x32xf32, #tpu.memory_space<vmem>>, vector<32x32xf32>
    %cst_52 = arith.constant dense<0.000000e+00> : vector<16x32xf32>
    %142 = tpu.matmul %140, %141, %cst_52 {dimension_numbers = #tpu.dot_dimension_numbers<[1], [0], [0], [1], [0, 0, 1, 1], [], []>} : vector<16x32xf32>, vector<32x32xf32>, vector<16x32xf32> -> vector<16x32xf32>
    %143 = tpu.reciprocal %142 {approx = true} : vector<16x32xf32> -> vector<16x32xf32>
    %144 = arith.mulf %140, %143 : vector<16x32xf32>
    %c0_53 = arith.constant 0 : index
    %c0_54 = arith.constant 0 : index
    %145 = vector.load %arg9[%c0_53, %c0_54] : memref<32x256xf32, #tpu.memory_space<vmem>>, vector<32x256xf32>
    %cst_55 = arith.constant dense<0.000000e+00> : vector<16x256xf32>
    %146 = tpu.matmul %144, %145, %cst_55 {dimension_numbers = #tpu.dot_dimension_numbers<[1], [0], [0], [1], [0, 0, 1, 1], [], []>} : vector<16x32xf32>, vector<32x256xf32>, vector<16x256xf32> -> vector<16x256xf32>
    %147 = arith.mulf %146, %130 : vector<16x256xf32>
    %c0_56 = arith.constant 0 : index
    %c0_57 = arith.constant 0 : index
    %148 = vector.load %arg10[%c0_56, %c0_57] : memref<256x64xf32, #tpu.memory_space<vmem>>, vector<256x64xf32>
    %cst_58 = arith.constant dense<0.000000e+00> : vector<16x64xf32>
    %149 = tpu.matmul %147, %148, %cst_58 {dimension_numbers = #tpu.dot_dimension_numbers<[1], [0], [0], [1], [0, 0, 1, 1], [], []>} : vector<16x256xf32>, vector<256x64xf32>, vector<16x64xf32> -> vector<16x64xf32>
    %c0_59 = arith.constant 0 : index
    %c0_60 = arith.constant 0 : index
    %150 = vector.load %arg11[%c0_59, %c0_60] : memref<1x64xf32, #tpu.memory_space<vmem>>, vector<1x64xf32>
    %151 = vector.broadcast %150 : vector<1x64xf32> to vector<16x64xf32>
    %152 = arith.addf %149, %151 : vector<16x64xf32>
    %153 = vector.extract_strided_slice %152 {offsets = [0, 0], sizes = [16, 32], strides = [1, 1]} : vector<16x64xf32> to vector<16x32xf32>
    %154 = vector.extract_strided_slice %152 {offsets = [0, 32], sizes = [16, 32], strides = [1, 1]} : vector<16x64xf32> to vector<16x32xf32>
    %155 = tpu.concatenate %153, %154 in 0 : vector<16x32xf32>, vector<16x32xf32> -> vector<32x32xf32>
    %c0_61 = arith.constant 0 : index
    %c0_62 = arith.constant 0 : index
    %156 = vector.load %arg12[%c0_61, %c0_62] : memref<32x8xf32, #tpu.memory_space<vmem>>, vector<32x8xf32>
    %cst_63 = arith.constant dense<0.000000e+00> : vector<32x8xf32>
    %157 = tpu.matmul %155, %156, %cst_63 {dimension_numbers = #tpu.dot_dimension_numbers<[1], [0], [0], [1], [0, 0, 1, 1], [], []>} : vector<32x32xf32>, vector<32x8xf32>, vector<32x8xf32> -> vector<32x8xf32>
    %c0_64 = arith.constant 0 : index
    %c0_65 = arith.constant 0 : index
    %158 = vector.load %arg13[%c0_64, %c0_65] : memref<1x8xf32, #tpu.memory_space<vmem>>, vector<1x8xf32>
    %159 = vector.broadcast %158 : vector<1x8xf32> to vector<32x8xf32>
    %160 = arith.addf %157, %159 : vector<32x8xf32>
    %cst_66 = arith.constant 0.000000e+00 : f32
    %161 = vector.broadcast %cst_66 : f32 to vector<32x8xf32>
    %162 = arith.maximumf %160, %161 : vector<32x8xf32>
    %c0_67 = arith.constant 0 : index
    %c0_68 = arith.constant 0 : index
    %163 = vector.load %arg14[%c0_67, %c0_68] : memref<1x8xf32, #tpu.memory_space<vmem>>, vector<1x8xf32>
    %164 = vector.broadcast %163 : vector<1x8xf32> to vector<32x8xf32>
    %165 = arith.mulf %162, %164 : vector<32x8xf32>
    %cst_69 = arith.constant dense<0.000000e+00> : vector<32xf32>
    %166 = vector.multi_reduction <add>, %165, %cst_69 [1] : vector<32x8xf32> to vector<32xf32>
    %167 = vector.shape_cast %166 : vector<32xf32> to vector<32x1xf32>
    %c0_70 = arith.constant 0 : index
    %168 = memref.load %arg15[%c0_70] : memref<1xf32, #tpu.memory_space<smem>>
    %169 = vector.broadcast %168 : f32 to vector<32x1xf32>
    %170 = arith.addf %167, %169 : vector<32x1xf32>
    %171 = vector.extract_strided_slice %170 {offsets = [0, 0], sizes = [16, 1], strides = [1, 1]} : vector<32x1xf32> to vector<16x1xf32>
    %172 = vector.extract_strided_slice %170 {offsets = [16, 0], sizes = [16, 1], strides = [1, 1]} : vector<32x1xf32> to vector<16x1xf32>
    %173 = tpu.concatenate %171, %172 in 1 : vector<16x1xf32>, vector<16x1xf32> -> vector<16x2xf32>
    %cst_71 = arith.constant dense<0xFF800000> : vector<16xf32>
    %174 = vector.multi_reduction <maximumf>, %173, %cst_71 [1] : vector<16x2xf32> to vector<16xf32>
    %175 = vector.shape_cast %174 : vector<16xf32> to vector<16x1xf32>
    %176 = vector.broadcast %175 : vector<16x1xf32> to vector<16x2xf32>
    %177 = arith.subf %173, %176 : vector<16x2xf32>
    %178 = math.exp %177 : vector<16x2xf32>
    %cst_72 = arith.constant dense<0.000000e+00> : vector<16xf32>
    %179 = vector.multi_reduction <add>, %178, %cst_72 [1] : vector<16x2xf32> to vector<16xf32>
    %180 = vector.shape_cast %179 : vector<16xf32> to vector<16x1xf32>
    %181 = tpu.reciprocal %180 {approx = true} : vector<16x1xf32> -> vector<16x1xf32>
    %182 = vector.broadcast %181 : vector<16x1xf32> to vector<16x2xf32>
    %183 = arith.mulf %178, %182 : vector<16x2xf32>
    %184 = vector.extract_strided_slice %183 {offsets = [0, 0], sizes = [16, 1], strides = [1, 1]} : vector<16x2xf32> to vector<16x1xf32>
    %185 = vector.broadcast %184 : vector<16x1xf32> to vector<16x32xf32>
    %186 = arith.mulf %185, %153 : vector<16x32xf32>
    %187 = vector.extract_strided_slice %183 {offsets = [0, 1], sizes = [16, 1], strides = [1, 1]} : vector<16x2xf32> to vector<16x1xf32>
    %188 = vector.broadcast %187 : vector<16x1xf32> to vector<16x32xf32>
    %189 = arith.mulf %188, %154 : vector<16x32xf32>
    %190 = arith.addf %186, %189 : vector<16x32xf32>
    %c0_73 = arith.constant 0 : index
    %c0_74 = arith.constant 0 : index
    %191 = vector.load %arg16[%c0_73, %c0_74] : memref<32x8xf32, #tpu.memory_space<vmem>>, vector<32x8xf32>
    %cst_75 = arith.constant dense<0.000000e+00> : vector<16x8xf32>
    %192 = tpu.matmul %190, %191, %cst_75 {dimension_numbers = #tpu.dot_dimension_numbers<[1], [0], [0], [1], [0, 0, 1, 1], [], []>} : vector<16x32xf32>, vector<32x8xf32>, vector<16x8xf32> -> vector<16x8xf32>
    %c0_76 = arith.constant 0 : index
    %c0_77 = arith.constant 0 : index
    %193 = vector.load %arg17[%c0_76, %c0_77] : memref<1x8xf32, #tpu.memory_space<vmem>>, vector<1x8xf32>
    %194 = vector.broadcast %193 : vector<1x8xf32> to vector<16x8xf32>
    %195 = arith.addf %192, %194 : vector<16x8xf32>
    %cst_78 = arith.constant dense<0xFF800000> : vector<16xf32>
    %196 = vector.multi_reduction <maximumf>, %195, %cst_78 [1] : vector<16x8xf32> to vector<16xf32>
    %197 = vector.shape_cast %196 : vector<16xf32> to vector<16x1xf32>
    %198 = vector.broadcast %197 : vector<16x1xf32> to vector<16x8xf32>
    %199 = arith.subf %195, %198 : vector<16x8xf32>
    %200 = math.exp %199 : vector<16x8xf32>
    %cst_79 = arith.constant dense<0.000000e+00> : vector<16xf32>
    %201 = vector.multi_reduction <add>, %200, %cst_79 [1] : vector<16x8xf32> to vector<16xf32>
    %202 = vector.shape_cast %201 : vector<16xf32> to vector<16x1xf32>
    %203 = math.log %202 : vector<16x1xf32>
    %204 = vector.broadcast %203 : vector<16x1xf32> to vector<16x8xf32>
    %205 = arith.subf %199, %204 : vector<16x8xf32>
    %c0_80 = arith.constant 0 : index
    %c0_81 = arith.constant 0 : index
    %206 = vector.load %arg18[%c0_80, %c0_81] : memref<16x8xf32, #tpu.memory_space<vmem>>, vector<16x8xf32>
    tpu.vector_store %arg18[%c0_80, %c0_81], %205 {strides = array<i32>} : memref<16x8xf32, #tpu.memory_space<vmem>>, vector<16x8xf32>,
    return
  }
}

</mosaic_0001>

<bundles_post_ra>
// kernel: dhgnn_forward.1
= control target key start
LH: loop header
LB: loop body
LE: loop exit
PB: predicated region body
PF: predicated region fallthrough
CT: control target
= control target key end

     0   :  { %vm73_vm0 = vcmask 130048   ;;  %vm179_vm1 = vcmask 261120   ;;  %v2184_v26 = vmov 0   ;;  %v305_v49 = vlaneseq  ;;  %s2810_s4 = inlined_call_operand.vmem [shape: f32[16,32], index: 4, kind: input, shape index: {}]   ;;  %s2811_s0 = inlined_call_operand.vmem [shape: f32[32,16], index: 0, kind: input, shape index: {}]   ;;  %s2812_s1 = inlined_call_operand.vmem [shape: f32[32,32], index: 1, kind: input, shape index: {}]   ;;  %s2813_s5 = inlined_call_operand.vmem [shape: f32[1,32], index: 5, kind: input, shape index: {}]   ;;  %s2814_s2 = inlined_call_operand.vmem [shape: s32[16,1], index: 2, kind: input, shape index: {}]   ;;  %s2815_s3 = inlined_call_operand.vmem [shape: s32[16,4], index: 3, kind: input, shape index: {}]   ;;  %s2816_s6 = inlined_call_operand.vmem [shape: f32[256,32], index: 6, kind: input, shape index: {}]   ;;  %s2817_s7 = inlined_call_operand.vmem [shape: f32[1,32], index: 7, kind: input, shape index: {}]   ;;  %s2818_s8 = inlined_call_operand.vmem [shape: f32[32,32], index: 8, kind: input, shape index: {}]   ;;  %s2819_s9 = inlined_call_operand.vmem [shape: f32[32,256], index: 9, kind: input, shape index: {}]   ;;  %s2820_s10 = inlined_call_operand.vmem [shape: f32[256,64], index: 10, kind: input, shape index: {}]   ;;  %s2821_s12 = inlined_call_operand.vmem [shape: f32[32,8], index: 12, kind: input, shape index: {}]   ;;  %s2822_s11 = inlined_call_operand.vmem [shape: f32[1,64], index: 11, kind: input, shape index: {}]   ;;  %s2823_s13 = inlined_call_operand.vmem [shape: f32[1,8], index: 13, kind: input, shape index: {}]   ;;  %s2824_s14 = inlined_call_operand.vmem [shape: f32[1,8], index: 14, kind: input, shape index: {}]   ;;  %s2825_s15 = inlined_call_operand.<no memory space> [shape: f32[1], index: 15, kind: input, shape index: {}]   ;;  %s2826_s16 = inlined_call_operand.vmem [shape: f32[32,8], index: 16, kind: input, shape index: {}]   ;;  %s2827_s17 = inlined_call_operand.vmem [shape: f32[1,8], index: 17, kind: input, shape index: {}]   ;;  %s2828_s18 = inlined_call_operand.vmem [shape: f32[16,8], index: 18, kind: output, shape index: {}]  }
   0x1   :  { %2832 = sst [smem:[#allocation4_spill]] %s2810_s4  ;;  %v1660_v8 = vld [vmem:[%s2813_s5] ss:$0 sm:$0xff]  ;;  %2142 = vset.pattern.permute.xlu0 %v2184_v26  ;;  %2143 = vset.pattern.permute.xlu1 %v2184_v26  ;;  %v308_v41 = vld [vmem:[%s2814_s2 + $0x8] sm:$0xff]  ;;  %v2185_v54 = vmov 0.0   ;;  %vm2345_vm3 = vmpackc.low %vm179_vm1, %vm179_vm1 }
   0x2   :  { %2833 = sst [smem:[#allocation5_spill]] %s2811_s0  ;;  %s2835_s29 = sld [smem:[#allocation4_spill]]  ;;  %v307_v42 = vld [vmem:[%s2814_s2] sm:$0xff]  ;;  %v2338_v52 = vand.u32 127, %v305_v49 }
   0x3   :  { %2834 = sst [smem:[#allocation6_spill]] %s2812_s1  ;;  %s2836_s20 = sld [smem:[#allocation5_spill]] }
   0x4   :  { %s2837_s28 = sld [smem:[#allocation6_spill]] }
   0x8   :  { %v64_v0 = vld [vmem:[%s2835_s29] sm:$0xff]  ;;  %v65_v1 = vld [vmem:[%s2835_s29 + $0x8] sm:$0xff]  ;;  %s2191_s29 = smov 96  }
   0x9   :  { %v60_v2 = vld [vmem:[%s2836_s20] sm:$0xff]  ;;  %v1982_v3 = vpack.c.bf16 %v65_v1, %v64_v0  ;;  %v61_v4 = vld [vmem:[%s2836_s20 + $0x8] sm:$0xff]  ;;  %v62_v5 = vld [vmem:[%s2836_s20 + $0x10] sm:$0xff] }
   0xa   :  { %1872 = vmatprep.mubr.msk.f32.mxu0 %vm73_vm0, %v60_v2  ;;  %v63_v6 = vld [vmem:[%s2836_s20 + $0x18] sm:$0xff]  ;;  %v175_v7 = vld [vmem:[%s2837_s28] sm:$0xff]  ;;  %v176_v23 = vld [vmem:[%s2837_s28 + $0x8] sm:$0xff] }
   0xb   :  { %1983 = vmatprep.subr.bf16.mxu0 %v1982_v3  ;;  %1886 = vmatprep.mubr.msk.f32.mxu1 %vm179_vm1, %v175_v7  ;;  %v177_v24 = vld [vmem:[%s2837_s28 + $0x10] sm:$0xff]  ;;  %v178_v25 = vld [vmem:[%s2837_s28 + $0x18] sm:$0xff]  ;;  %s2190_s28 = smov 64  }
   0xc   :  { %1985 = vmatpush3.bf16.msra.mxu0 %v1982_v3 }
   0xf   :  { %1873 = vmatmul.mubr.msk.f32.vlgmr.msra.gmra.mrb[0].mxu0 %vm73_vm0, %v61_v4 }
  0x10   :  { %1875 = vmatprep.mubr.msk.f32.mxu0 %vm73_vm0, %v62_v5 }
  0x13   :  { %1876 = vmatmul.mubr.msk.f32.gmra.mrb[2].mxu0 %vm73_vm0, %v63_v6 }
  0xe2   :  { %v1874_v9 = vpop.f32.mrb[0].mxu0 }
  0xe3   :  { %v158_v10 = vadd.f32 %v1874_v9, %v1660_v8  ;;  %v152_v11 = vpop.f32.mrb[1].mxu0 }
  0xe4   :  { %v153_v12 = vadd.f32 %v1660_v8, %v152_v11  ;;  %v2367_v11 = vcvt.s32.f32 %v2338_v52 }
  0xe5   :  { %v172_v13 = vmax.f32 %v158_v10, 0.0 }
  0xe6   :  { %v171_v14 = vmax.f32 %v153_v12, 0.0  ;;  %v1877_v15 = vpop.f32.mrb[2].mxu0 }
  0xe7   :  { %v168_v16 = vadd.f32 %v1877_v15, %v1660_v8  ;;  %v162_v17 = vpop.f32.mrb[3].mxu0 }
  0xe8   :  { %v163_v18 = vadd.f32 %v1660_v8, %v162_v17  ;;  %v1986_v19 = vpack.c.bf16 %v172_v13, %v171_v14 }
  0xe9   :  { %v174_v20 = vmax.f32 %v168_v16, 0.0 }
  0xea   :  { %v173_v21 = vmax.f32 %v163_v18, 0.0  ;;  %1987 = vmatprep.subr.bf16.mxu1 %v1986_v19 }
  0xeb   :  { %1989 = vmatpush3.bf16.msra.mxu1 %v1986_v19 }
  0xec   :  { %v1990_v22 = vpack.c.bf16 %v174_v20, %v173_v21 }
  0xee   :  { %1991 = vmatprep.subr.bf16.mxu1 %v1990_v22 }
  0xef   :  { %1993 = vmatpush3.bf16.msra.mxu1 %v1990_v22 }
  0xf2   :  { %1887 = vmatmul.mubr.msk.f32.vlgmr.msra.gmra.mrb[0].mxu1 %vm179_vm1, %v176_v23 }
  0xf3   :  { %1889 = vmatprep.mubr.msk.f32.mxu1 %vm179_vm1, %v177_v24 }
  0xf6   :  { %1890 = vmatmul.mubr.msk.f32.gmra.mrb[2].mxu1 %vm179_vm1, %v178_v25 }
 0x1c5   :  { %v1888_v27 = vpop.f32.mrb[0].mxu1 }
 0x1c6   :  { %v258_v28 = vpop.f32.mrb[1].mxu1  ;;  %v278_v29 = vmul.f32 %v1888_v27, %v1888_v27 }
 0x1c7   :  { %v2326_v30 = vpack.c.bf16 %v1888_v27, %v258_v28  ;;  %v277_v32 = vmul.f32 %v258_v28, %v258_v28 }
 0x1c8   :  { %v284_v31 = vsel %vm179_vm1, %v278_v29, 0.0 }
 0x1c9   :  { %285 = vadd.xlane.f32.xlu0 %v284_v31  ;;  %v1891_v33 = vpop.f32.mrb[2].mxu1  ;;  %v281_v37 = vsel %vm179_vm1, %v277_v32, 0.0 }
 0x1ca   :  { %v268_v34 = vpop.f32.mrb[3].mxu1  ;;  %v280_v35 = vmul.f32 %v1891_v33, %v1891_v33 }
 0x1cb   :  { %v2018_v36 = vpack.c.bf16 %v1891_v33, %v268_v34  ;;  %v279_v39 = vmul.f32 %v268_v34, %v268_v34 }
 0x1cc   :  { %v290_v38 = vsel %vm179_vm1, %v280_v35, 0.0 }
 0x1cd   :  { %282 = vadd.xlane.f32.xlu0 %v281_v37  ;;  %291 = vadd.xlane.f32.xlu1 %v290_v38  ;;  %v287_v40 = vsel %vm179_vm1, %v279_v39, 0.0 }
 0x1d1   :  { %288 = vadd.xlane.f32.xlu1 %v287_v40 }
 0x1e2   :  { %313 = vperm.xlu1 %2143, %v308_v41  }
 0x1e3   :  { %310 = vperm.xlu0 %2142, %v307_v42  }
 0x256   :  { %v286_v43 = vpop.xlane.xlu0 %285 }
 0x257   :  { %v294_v44 = vmax.f32 %v286_v43, 1e-24 }
 0x259   :  { %2152 = vrsqrt.f32 %v294_v44 }
 0x25a   :  { %v283_v45 = vpop.xlane.xlu0 %282  ;;  %v292_v46 = vpop.xlane.xlu1 %291 }
 0x25b   :  { %v293_v47 = vmax.f32 %v283_v45, 1e-24  ;;  %v296_v48 = vmax.f32 %v292_v46, 1e-24 }
 0x25d   :  { %2154 = vrsqrt.f32 %v293_v47 }
 0x25e   :  { %v289_v50 = vpop.xlane.xlu1 %288  ;;  %2156 = vrsqrt.f32 %v296_v48 }
 0x25f   :  { %v295_v51 = vmax.f32 %v289_v50, 1e-24 }
 0x261   :  { %2158 = vrsqrt.f32 %v295_v51 }
 0x262   :  { %v311_v53 = vpop.permute.xlu0 %310  ;;  %v314_v0 = vpop.permute.xlu1 %313 }
 0x263   :  { %vm315_vm2 = vcmp.eq.s32.totalorder %v2338_v52, %v311_v53  ;;  %v2153_v56 = vpop.eup %2152  ;;  %vm316_vm4 = vcmp.eq.s32.totalorder %v2338_v52, %v314_v0 }
 0x264   :  { %v1669_v55 = vsel %vm315_vm2, 1.0, %v2185_v54  ;;  %v302_v59 = vmul.f32 %v2153_v56, %v1888_v27  ;;  %v1670_v4 = vsel %vm316_vm4, 1.0, %v2185_v54 }
 0x265   :  { %1900 = vmatprep.mubr.msk.f32.mxu0 %vm179_vm1, %v1669_v55 }
 0x267   :  { %v2155_v57 = vpop.eup %2154 }
 0x268   :  { %v301_v58 = vmul.f32 %v2155_v57, %v258_v28  ;;  %v2157_v60 = vpop.eup %2156 }
 0x269   :  { %v304_v2 = vmul.f32 %v2157_v60, %v1891_v33  ;;  %v2186_v60 = vmov 1  }
 0x26a   :  { %v1994_v62 = vpack.c.bf16 %v302_v59, %v301_v58  ;;  %v580_v59 = vld [vmem:[%s2815_s3] sm:$0xff] }
 0x26b   :  { %v2159_v63 = vpop.eup %2158 }
 0x26c   :  { %1995 = vmatprep.subr.bf16.mxu0 %v1994_v62  ;;  %2004 = vmatprep.subr.msk.bf16.mxu1 %vm2345_vm3, %v1994_v62  ;;  %v303_v1 = vmul.f32 %v2159_v63, %v268_v34 }
 0x26d   :  { %1997 = vmatpush3.bf16.msra.mxu0 %v1994_v62  ;;  %2007 = vmatpush3.bf16.xpose.msk.msra.mxu1 %vm2345_vm3, %v1994_v62 }
 0x26e   :  { %v1998_v3 = vpack.c.bf16 %v304_v2, %v303_v1 }
 0x270   :  { %1999 = vmatprep.subr.bf16.mxu0 %v1998_v3  ;;  %2010 = vmatprep.subr.msk.bf16.mxu1 %vm2345_vm3, %v1998_v3 }
 0x271   :  { %2001 = vmatpush3.bf16.msra.mxu0 %v1998_v3 }
 0x272   :  { %2015 = vmatprep.subr.bf16.mxu0 %v2326_v30 }
 0x274   :  { %1901 = vmatmul.mubr.msk.f32.vlgmr.msra.gmra.mrb[4].mxu0 %vm179_vm1, %v1670_v4 }
 0x275   :  { %2013 = vmatpush3.bf16.xpose.msk.msra.mxu1 %vm2345_vm3, %v1998_v3  ;;  %2017 = vmatpush3.bf16.msra.mxu0 %v2326_v30 }
 0x276   :  { %2019 = vmatprep.subr.bf16.mxu0 %v2018_v36 }
 0x279   :  { %2021 = vmatpush3.bf16.msra.mxu0 %v2018_v36 }
 0x347   :  { %v1902_v5 = vpop.f32.mrb[4].mxu0 }
 0x348   :  { %v393_v6 = vpop.f32.mrb[5].mxu0 }
 0x349   :  { %1911 = vmatprep.mubr.msk.f32.mxu1 %vm179_vm1, %v393_v6 }
 0x34a   :  { %1912 = vmatmul.mubr.msk.f32.vlgmr.msra.gmra.mrb[4].mxu1 %vm179_vm1, %v1902_v5 }
 0x41d   :  { %v1913_v7 = vpop.f32.mrb[4].mxu1 }
 0x41e   :  { %v486_v8 = vpop.f32.mrb[5].mxu1  ;;  %v499_v9 = vsel %vm179_vm1, %v1913_v7, -inf }
 0x41f   :  { %500 = vmax.xlane.f32.xlu0 %v499_v9  ;;  %v496_v10 = vsel %vm179_vm1, %v486_v8, -inf }
 0x420   :  { %497 = vmax.xlane.f32.xlu1 %v496_v10 }
 0x4ac   :  { %v501_v12 = vpop.xlane.xlu0 %500 }
 0x4ad   :  { %v498_v13 = vpop.xlane.xlu1 %497  ;;  %vm503_vm5 = vcmp.ge.f32.partialorder %v1913_v7, %v501_v12  ;;  %v581_v12 = vld [vmem:[%s2815_s3 + $0x8] sm:$0xff]  ;;  %s2189_s3 = smov 32  }
 0x4ae   :  { %vm502_vm6 = vcmp.ge.f32.partialorder %v486_v8, %v498_v13  ;;  %v505_v16 = vsel %vm503_vm5, %v2367_v11, 32.0  ;;  %v2187_v13 = vmov 3  }
 0x4af   :  { %v504_v14 = vsel %vm502_vm6, %v2367_v11, 32.0  ;;  %v509_v17 = vsel %vm179_vm1, %v505_v16, inf }
 0x4b0   :  { %v506_v15 = vsel %vm179_vm1, %v504_v14, inf  ;;  %v2188_v14 = vmov 2  }
 0x4b1   :  { %507 = vmin.xlane.f32.xlu1 %v506_v15 }
 0x4b5   :  { %510 = vmin.xlane.f32.xlu1 %v509_v17 }
 0x53e   :  { %v508_v18 = vpop.xlane.xlu1 %507 }
 0x53f   :  { %v2118_v19 = vtrunc.f32 %v508_v18 }
 0x541   :  { %v2119_v20 = vcvt.f32.s32 %v2118_v19 }
 0x542   :  { %v511_v21 = vpop.xlane.xlu1 %510 }
 0x543   :  { %vm514_vm7 = vcmp.eq.s32.totalorder %v2338_v52, %v2119_v20  ;;  %v2120_v22 = vtrunc.f32 %v511_v21 }
 0x544   :  { %v1679_v23 = vsel %vm514_vm7, 1.0, %v2185_v54  ;;  %v516_v24 = vsel %vm514_vm7, -1e+30, %v486_v8  ;;  %vm851_vm7 = vcmask 523520  }
 0x545   :  { %v2121_v25 = vcvt.f32.s32 %v2120_v22  ;;  %1922 = vmatprep.mubr.msk.f32.mxu0 %vm179_vm1, %v1679_v23  ;;  %v518_v27 = vsel %vm179_vm1, %v516_v24, -inf }
 0x546   :  { %519 = vmax.xlane.f32.xlu1 %v518_v27 }
 0x547   :  { %vm515_vm8 = vcmp.eq.s32.totalorder %v2338_v52, %v2121_v25 }
 0x548   :  { %v1680_v28 = vsel %vm515_vm8, 1.0, %v2185_v54  ;;  %v517_v29 = vsel %vm515_vm8, -1e+30, %v1913_v7 }
 0x549   :  { %1923 = vmatmul.mubr.msk.f32.vlgmr.msra.gmra.mrb[6].mxu0 %vm179_vm1, %v1680_v28  ;;  %v521_v30 = vsel %vm179_vm1, %v517_v29, -inf }
 0x54a   :  { %522 = vmax.xlane.f32.xlu1 %v521_v30 }
 0x5d3   :  { %v520_v31 = vpop.xlane.xlu1 %519 }
 0x5d4   :  { %vm524_vm9 = vcmp.ge.f32.partialorder %v516_v24, %v520_v31 }
 0x5d5   :  { %v526_v32 = vsel %vm524_vm9, %v2367_v11, 32.0 }
 0x5d6   :  { %v528_v33 = vsel %vm179_vm1, %v526_v32, inf }
 0x5d7   :  { %529 = vmin.xlane.f32.xlu1 %v528_v33  ;;  %v523_v34 = vpop.xlane.xlu1 %522 }
 0x5d8   :  { %vm525_vm10 = vcmp.ge.f32.partialorder %v517_v29, %v523_v34 }
 0x5d9   :  { %v527_v35 = vsel %vm525_vm10, %v2367_v11, 32.0 }
 0x5da   :  { %v531_v36 = vsel %vm179_vm1, %v527_v35, inf }
 0x5db   :  { %532 = vmin.xlane.f32.xlu1 %v531_v36 }
 0x61c   :  { %v1924_v37 = vpop.f32.mrb[6].mxu0 }
 0x61d   :  { %842 = vst.msk [vmem:[#allocation2 + $0x10] sm:$0xff] %vm179_vm1, %v1924_v37  ;;  %v762_v38 = vpop.f32.mrb[7].mxu0 }
 0x61e   :  { %841 = vst.msk [vmem:[#allocation2] sm:$0xff] %vm179_vm1, %v762_v38 }
 0x664   :  { %v530_v39 = vpop.xlane.xlu1 %529 }
 0x665   :  { %v2122_v40 = vtrunc.f32 %v530_v39 }
 0x667   :  { %v2123_v41 = vcvt.f32.s32 %v2122_v40 }
 0x668   :  { %v533_v42 = vpop.xlane.xlu1 %532 }
 0x669   :  { %vm536_vm11 = vcmp.eq.s32.totalorder %v2338_v52, %v2123_v41  ;;  %v2124_v43 = vtrunc.f32 %v533_v42 }
 0x66a   :  { %v1681_v44 = vsel %vm536_vm11, 1.0, %v2185_v54  ;;  %v538_v45 = vsel %vm536_vm11, -1e+30, %v516_v24 }
 0x66b   :  { %v2125_v46 = vcvt.f32.s32 %v2124_v43  ;;  %1925 = vmatprep.mubr.msk.f32.mxu0 %vm179_vm1, %v1681_v44  ;;  %v540_v47 = vsel %vm179_vm1, %v538_v45, -inf }
 0x66c   :  { %541 = vmax.xlane.f32.xlu0 %v540_v47 }
 0x66d   :  { %vm537_vm12 = vcmp.eq.s32.totalorder %v2338_v52, %v2125_v46 }
 0x66e   :  { %v1682_v48 = vsel %vm537_vm12, 1.0, %v2185_v54  ;;  %v539_v49 = vsel %vm537_vm12, -1e+30, %v517_v29 }
 0x66f   :  { %1926 = vmatmul.mubr.msk.f32.gmra.mrb[8].mxu0 %vm179_vm1, %v1682_v48  ;;  %v543_v50 = vsel %vm179_vm1, %v539_v49, -inf }
 0x670   :  { %544 = vmax.xlane.f32.xlu1 %v543_v50 }
 0x6f9   :  { %v542_v51 = vpop.xlane.xlu0 %541 }
 0x6fa   :  { %vm546_vm13 = vcmp.ge.f32.partialorder %v538_v45, %v542_v51  ;;  %v929_v51 = vld [vmem:[%s2816_s6 + $0x88] sm:$0xff] }
 0x6fb   :  { %v548_v53 = vsel %vm546_vm13, %v2367_v11, 32.0 }
 0x6fc   :  { %v550_v55 = vsel %vm179_vm1, %v548_v53, inf }
 0x6fd   :  { %551 = vmin.xlane.f32.xlu0 %v550_v55  ;;  %v545_v56 = vpop.xlane.xlu1 %544  ;;  %v912_v55 = vld [vmem:[%s2816_s6] sm:$0xff] }
 0x6fe   :  { %vm547_vm14 = vcmp.ge.f32.partialorder %v539_v49, %v545_v56  ;;  %v913_v56 = vld [vmem:[%s2816_s6 + $0x8] sm:$0xff] }
 0x6ff   :  { %v549_v57 = vsel %vm547_vm14, %v2367_v11, 32.0 }
 0x700   :  { %v553_v58 = vsel %vm179_vm1, %v549_v57, inf  ;;  %v2024_v57 = vpack.c.bf16 %v913_v56, %v912_v55 }
 0x701   :  { %554 = vmin.xlane.f32.xlu1 %v553_v58  ;;  %v930_v58 = vld [vmem:[%s2816_s6 + $0x90] sm:$0xff] }
 0x713   :  { %601 = vperm.xlu0 %2142, %v580_v59  }
 0x717   :  { %2145 = vset.pattern.permute.xlu0 %v2186_v60 }
 0x742   :  { %v1927_v61 = vpop.f32.mrb[8].mxu0 }
 0x743   :  { %v772_v62 = vpop.f32.mrb[9].mxu0 }
 0x78a   :  { %v552_v63 = vpop.xlane.xlu0 %551 }
 0x78b   :  { %v2126_v0 = vtrunc.f32 %v552_v63 }
 0x78d   :  { %v2127_v1 = vcvt.f32.s32 %v2126_v0  ;;  %v932_v0 = vld [vmem:[%s2816_s6 + $0xa0] sm:$0xff] }
 0x78e   :  { %v555_v2 = vpop.xlane.xlu1 %554 }
 0x78f   :  { %vm558_vm15 = vcmp.eq.s32.totalorder %v2338_v52, %v2127_v1  ;;  %v2128_v3 = vtrunc.f32 %v555_v2  ;;  %v933_v1 = vld [vmem:[%s2816_s6 + $0xa8] sm:$0xff] }
 0x790   :  { %v1683_v4 = vsel %vm558_vm15, 1.0, %v2185_v54  ;;  %v560_v5 = vsel %vm558_vm15, -1e+30, %v538_v45  ;;  %vm862_vm15 = vcmask 785920   ;;  %v2030_v2 = vpack.c.bf16 %v933_v1, %v932_v0 }
 0x791   :  { %v2129_v6 = vcvt.f32.s32 %v2128_v3  ;;  %1928 = vmatprep.mubr.msk.f32.mxu0 %vm179_vm1, %v1683_v4  ;;  %v562_v7 = vsel %vm179_vm1, %v560_v5, -inf  ;;  %v916_v3 = vld [vmem:[%s2816_s6 + $0x20] sm:$0xff]  ;;  %v917_v4 = vld [vmem:[%s2816_s6 + $0x28] sm:$0xff] }
 0x792   :  { %563 = vmax.xlane.f32.xlu0 %v562_v7  ;;  %v602_v15 = vpop.permute.xlu0 %601  ;;  %v935_v7 = vld [vmem:[%s2816_s6 + $0xb8] sm:$0xff] }
 0x793   :  { %vm559_vm0 = vcmp.eq.s32.totalorder %v2338_v52, %v2129_v6  ;;  %vm606_vm5 = vcmp.eq.s32.totalorder %v2338_v52, %v602_v15  ;;  %v934_v6 = vld [vmem:[%s2816_s6 + $0xb0] sm:$0xff]  ;;  %v936_v15 = vld [vmem:[%s2816_s6 + $0xc0] sm:$0xff] }
 0x794   :  { %v1684_v8 = vsel %vm559_vm0, 1.0, %v2185_v54  ;;  %v561_v9 = vsel %vm559_vm0, -1e+30, %v539_v49  ;;  %v1687_v38 = vsel %vm606_vm5, 1.0, %v2185_v54  ;;  %vm873_vm0 = vcmask 1048320  }
 0x795   :  { %1929 = vmatmul.mubr.msk.f32.gmra.mrb[10].mxu0 %vm179_vm1, %v1684_v8  ;;  %v565_v10 = vsel %vm179_vm1, %v561_v9, -inf }
 0x796   :  { %566 = vmax.xlane.f32.xlu1 %v565_v10  ;;  %v918_v10 = vld [vmem:[%s2816_s6 + $0x30] sm:$0xff] }
 0x7a7   :  { %604 = vperm.xlu1 %2143, %v581_v12  }
 0x7a8   :  { %616 = vperm.xlu0 %2145, %v581_v12  }
 0x7ab   :  { %2144 = vset.pattern.permute.xlu1 %v2186_v60 }
 0x7ac   :  { %613 = vperm.xlu1 %2144, %v580_v59   ;;  %2147 = vset.pattern.permute.xlu0 %v2187_v13 }
 0x7b0   :  { %2146 = vset.pattern.permute.xlu1 %v2188_v14 }
 0x7b1   :  { %625 = vperm.xlu1 %2146, %v580_v59  }
 0x7b5   :  { %628 = vperm.xlu1 %2146, %v581_v12  }
 0x7b9   :  { %2148 = vset.pattern.permute.xlu1 %v2187_v13 }
 0x81f   :  { %v564_v16 = vpop.xlane.xlu0 %563 }
 0x820   :  { %vm568_vm2 = vcmp.ge.f32.partialorder %v560_v5, %v564_v16  ;;  %v2032_v5 = vpack.c.bf16 %v917_v4, %v916_v3  ;;  %v937_v16 = vld [vmem:[%s2816_s6 + $0xc8] sm:$0xff] }
 0x821   :  { %v570_v17 = vsel %vm568_vm2, %v2367_v11, 32.0  ;;  %vm1461_vm2 = vcmask 64512  }
 0x822   :  { %v572_v18 = vsel %vm179_vm1, %v570_v17, inf }
 0x823   :  { %573 = vmin.xlane.f32.xlu0 %v572_v18  ;;  %v567_v19 = vpop.xlane.xlu1 %566  ;;  %v2038_v18 = vpack.c.bf16 %v937_v16, %v936_v15 }
 0x824   :  { %vm569_vm3 = vcmp.ge.f32.partialorder %v561_v9, %v567_v19  ;;  %v2034_v9 = vpack.c.bf16 %v935_v7, %v934_v6  ;;  %v920_v19 = vld [vmem:[%s2816_s6 + $0x40] sm:$0xff] }
 0x825   :  { %v571_v20 = vsel %vm569_vm3, %v2367_v11, 32.0  ;;  %v1038_v7 = vld [vmem:[%s2818_s8] sm:$0xff]  ;;  %vm1480_vm3 = vcmask 7168  }
 0x826   :  { %v575_v21 = vsel %vm179_vm1, %v571_v20, inf  ;;  %v921_v20 = vld [vmem:[%s2816_s6 + $0x48] sm:$0xff] }
 0x827   :  { %576 = vmin.xlane.f32.xlu1 %v575_v21  ;;  %v605_v11 = vpop.permute.xlu1 %604  ;;  %v617_v27 = vpop.permute.xlu0 %616 }
 0x828   :  { %vm607_vm8 = vcmp.eq.s32.totalorder %v2338_v52, %v605_v11  ;;  %vm619_vm10 = vcmp.eq.s32.totalorder %v2338_v52, %v617_v27  ;;  %v939_v11 = vld [vmem:[%s2816_s6 + $0xd8] sm:$0xff]  ;;  %v922_v27 = vld [vmem:[%s2816_s6 + $0x50] sm:$0xff] }
 0x829   :  { %v1688_v40 = vsel %vm607_vm8, 1.0, %v2185_v54  ;;  %v1690_v43 = vsel %vm619_vm10, 1.0, %v2185_v54 }
 0x82b   :  { %v614_v24 = vpop.permute.xlu1 %613 }
 0x82c   :  { %vm618_vm9 = vcmp.eq.s32.totalorder %v2338_v52, %v614_v24 }
 0x82d   :  { %v1689_v41 = vsel %vm618_vm9, 1.0, %v2185_v54 }
 0x830   :  { %v626_v25 = vpop.permute.xlu1 %625 }
 0x831   :  { %vm630_vm11 = vcmp.eq.s32.totalorder %v2338_v52, %v626_v25 }
 0x832   :  { %v1691_v45 = vsel %vm630_vm11, 1.0, %v2185_v54 }
 0x834   :  { %v629_v28 = vpop.permute.xlu1 %628 }
 0x835   :  { %vm631_vm13 = vcmp.eq.s32.totalorder %v2338_v52, %v629_v28  ;;  %v923_v28 = vld [vmem:[%s2816_s6 + $0x58] sm:$0xff] }
 0x836   :  { %v1692_v47 = vsel %vm631_vm13, 1.0, %v2185_v54 }
 0x838   :  { %640 = vperm.xlu1 %2148, %v581_v12   ;;  %v919_v12 = vld [vmem:[%s2816_s6 + $0x38] sm:$0xff] }
 0x839   :  { %637 = vperm.xlu0 %2147, %v580_v59   ;;  %v931_v59 = vld [vmem:[%s2816_s6 + $0x98] sm:$0xff]  ;;  %v2036_v14 = vpack.c.bf16 %v919_v12, %v918_v10 }
 0x83a   :  { %v1041_v12 = vld [vmem:[%s2818_s8 + $0x18] sm:$0xff] }
 0x83c   :  { %2150 = vset.pattern.permute.xlu1 %v2186_v60 }
 0x83d   :  { %845 = vrot.lane.b32.xlu0 %v772_v62, %s2189_s3  ;;  %v915_v62 = vld [vmem:[%s2816_s6 + $0x18] sm:$0xff] }
 0x83e   :  { %2149 = vset.pattern.permute.xlu0 %v2186_v60  ;;  %v2026_v60 = vpack.c.bf16 %v931_v59, %v930_v58 }
 0x841   :  { %847 = vrot.lane.b32.xlu0 %v1927_v61, %s2189_s3  ;;  %v914_v61 = vld [vmem:[%s2816_s6 + $0x10] sm:$0xff] }
 0x842   :  { %v2028_v63 = vpack.c.bf16 %v915_v62, %v914_v61  ;;  %v1711_v62 = vld [vmem:[%s2817_s7] ss:$0 sm:$0xff] }
 0x868   :  { %v1930_v22 = vpop.f32.mrb[10].mxu0 }
 0x869   :  { %858 = vrot.lane.b32.xlu0 %v1930_v22, %s2190_s28  ;;  %v782_v23 = vpop.f32.mrb[11].mxu0  ;;  %v2040_v22 = vpack.c.bf16 %v921_v20, %v920_v19 }
 0x86d   :  { %856 = vrot.lane.b32.xlu0 %v782_v23, %s2190_s28  ;;  %v938_v23 = vld [vmem:[%s2816_s6 + $0xd0] sm:$0xff] }
 0x86e   :  { %v2042_v25 = vpack.c.bf16 %v939_v11, %v938_v23  ;;  %v1130_v23 = vld [vmem:[%s2819_s9 + $0x18] sm:$0xff] }
 0x8b0   :  { %v574_v29 = vpop.xlane.xlu0 %573 }
 0x8b1   :  { %v2130_v30 = vtrunc.f32 %v574_v29 }
 0x8b3   :  { %v2131_v31 = vcvt.f32.s32 %v2130_v30  ;;  %v2044_v30 = vpack.c.bf16 %v923_v28, %v922_v27  ;;  %v1132_v28 = vld [vmem:[%s2819_s9 + $0x28] sm:$0xff] }
 0x8b4   :  { %v577_v32 = vpop.xlane.xlu1 %576 }
 0x8b5   :  { %vm594_vm4 = vcmp.eq.s32.totalorder %v2338_v52, %v2131_v31  ;;  %v2132_v33 = vtrunc.f32 %v577_v32  ;;  %v940_v31 = vld [vmem:[%s2816_s6 + $0xe0] sm:$0xff]  ;;  %v941_v32 = vld [vmem:[%s2816_s6 + $0xe8] sm:$0xff] }
 0x8b6   :  { %v1685_v34 = vsel %vm594_vm4, 1.0, %v2185_v54  ;;  %vm1483_vm4 = vcmask 15360  }
 0x8b7   :  { %v2133_v35 = vcvt.f32.s32 %v2132_v33  ;;  %1931 = vmatprep.mubr.msk.f32.mxu0 %vm179_vm1, %v1685_v34  ;;  %v2046_v34 = vpack.c.bf16 %v941_v32, %v940_v31  ;;  %v1131_v31 = vld [vmem:[%s2819_s9 + $0x20] sm:$0xff]  ;;  %v1133_v32 = vld [vmem:[%s2819_s9 + $0x30] sm:$0xff] }
 0x8b8   :  { %v638_v36 = vpop.permute.xlu0 %637  ;;  %v641_v44 = vpop.permute.xlu1 %640 }
 0x8b9   :  { %vm595_vm6 = vcmp.eq.s32.totalorder %v2338_v52, %v2133_v35  ;;  %vm642_vm12 = vcmp.eq.s32.totalorder %v2338_v52, %v638_v36  ;;  %vm643_vm14 = vcmp.eq.s32.totalorder %v2338_v52, %v641_v44  ;;  %v928_v52 = vld [vmem:[%s2816_s6 + $0x80] sm:$0xff]  ;;  %v925_v36 = vld [vmem:[%s2816_s6 + $0x68] sm:$0xff]  ;;  %v927_v44 = vld [vmem:[%s2816_s6 + $0x78] sm:$0xff] }
 0x8ba   :  { %v1686_v37 = vsel %vm595_vm6, 1.0, %v2185_v54  ;;  %v1693_v46 = vsel %vm642_vm12, 1.0, %v2185_v54  ;;  %v1694_v48 = vsel %vm643_vm14, 1.0, %v2185_v54  ;;  %v2022_v53 = vpack.c.bf16 %v929_v51, %v928_v52  ;;  %v924_v35 = vld [vmem:[%s2816_s6 + $0x60] sm:$0xff] }
 0x8bb   :  { %1932 = vmatmul.mubr.msk.f32.gmra.mrb[12].mxu0 %vm179_vm1, %v1686_v37 }
 0x8bc   :  { %v846_v39 = vpop.permute.xlu0 %845  ;;  %1934 = vmatprep.mubr.msk.f32.mxu0 %vm179_vm1, %v1687_v38  ;;  %2023 = vmatprep.subr.bf16.mxu0 %v2022_v53  ;;  %v2048_v38 = vpack.c.bf16 %v925_v36, %v924_v35  ;;  %v1239_v35 = vld [vmem:[%s2820_s10 + $0x88] sm:$0xff] }
 0x8bd   :  { %852 = vst.msk [vmem:[#allocation2] sm:$0xff] %vm851_vm7, %v846_v39  ;;  %2025 = vmatpush3.bf16.msra.mxu0 %v2024_v57  ;;  %v942_v39 = vld [vmem:[%s2816_s6 + $0xf0] sm:$0xff] }
 0x8be   :  { %2027 = vmatprep.subr.bf16.mxu0 %v2026_v60 }
 0x8bf   :  { %1935 = vmatmul.mubr.msk.f32.gmra.mrb[14].mxu0 %vm179_vm1, %v1688_v40  ;;  %v943_v40 = vld [vmem:[%s2816_s6 + $0xf8] sm:$0xff] }
 0x8c0   :  { %v848_v42 = vpop.permute.xlu0 %847  ;;  %1937 = vmatprep.mubr.msk.f32.mxu0 %vm179_vm1, %v1689_v41 }
 0x8c1   :  { %853 = vst.msk [vmem:[#allocation2 + $0x10] sm:$0xff] %vm851_vm7, %v848_v42  ;;  %2029 = vmatpush3.bf16.msra.mxu0 %v2028_v63  ;;  %v2050_v42 = vpack.c.bf16 %v943_v40, %v942_v39  ;;  %v1222_v39 = vld [vmem:[%s2820_s10] sm:$0xff]  ;;  %v1223_v40 = vld [vmem:[%s2820_s10 + $0x8] sm:$0xff] }
 0x8c2   :  { %2031 = vmatprep.subr.bf16.mxu0 %v2030_v2 }
 0x8c3   :  { %1938 = vmatmul.mubr.msk.f32.gmra.mrb[16].mxu0 %vm179_vm1, %v1690_v43  ;;  %v926_v43 = vld [vmem:[%s2816_s6 + $0x70] sm:$0xff] }
 0x8c4   :  { %1940 = vmatprep.mubr.msk.f32.mxu0 %vm179_vm1, %v1691_v45 }
 0x8c5   :  { %2033 = vmatpush3.bf16.msra.mxu0 %v2032_v5 }
 0x8c6   :  { %2035 = vmatprep.subr.bf16.mxu0 %v2034_v9  ;;  %v1040_v9 = vld [vmem:[%s2818_s8 + $0x10] sm:$0xff] }
 0x8c7   :  { %1941 = vmatmul.mubr.msk.f32.gmra.mrb[18].mxu0 %vm179_vm1, %v1692_v47 }
 0x8c8   :  { %1943 = vmatprep.mubr.msk.f32.mxu0 %vm179_vm1, %v1693_v46  ;;  %v2052_v46 = vpack.c.bf16 %v927_v44, %v926_v43  ;;  %v2072_v44 = vpack.c.bf16 %v1223_v40, %v1222_v39  ;;  %v1716_v40 = vld [vmem:[%s2822_s11] ss:$0 sm:$0xff] }
 0x8c9   :  { %2037 = vmatpush3.bf16.msra.mxu0 %v2036_v14 }
 0x8ca   :  { %2039 = vmatprep.subr.bf16.mxu0 %v2038_v18 }
 0x8cb   :  { %1944 = vmatmul.mubr.msk.f32.gmra.mrb[20].mxu0 %vm179_vm1, %v1694_v48 }
 0x8cd   :  { %2041 = vmatpush3.bf16.msra.mxu0 %v2040_v22  ;;  %v1128_v22 = vld [vmem:[%s2819_s9 + $0x8] sm:$0xff] }
 0x8ce   :  { %2043 = vmatprep.subr.bf16.mxu0 %v2042_v25  ;;  %v2062_v11 = vpack.c.bf16 %v1130_v23, %v1128_v22  ;;  %v1129_v25 = vld [vmem:[%s2819_s9 + $0x10] sm:$0xff] }
 0x8cf   :  { %v1252_v23 = vld [vmem:[%s2820_s10 + $0xf0] sm:$0xff] }
 0x8d1   :  { %2045 = vmatpush3.bf16.msra.mxu0 %v2044_v30 }
 0x8d2   :  { %2047 = vmatprep.subr.bf16.mxu0 %v2046_v34  ;;  %v1238_v34 = vld [vmem:[%s2820_s10 + $0x80] sm:$0xff] }
 0x8d3   :  { %v2070_v36 = vpack.c.bf16 %v1239_v35, %v1238_v34 }
 0x8d5   :  { %2049 = vmatpush3.bf16.msra.mxu0 %v2048_v38 }
 0x8d6   :  { %2051 = vmatprep.subr.bf16.mxu0 %v2050_v42  ;;  %v1241_v42 = vld [vmem:[%s2820_s10 + $0x98] sm:$0xff] }
 0x8d9   :  { %2053 = vmatpush3.bf16.msra.mxu0 %v2052_v46 }
 0x8db   :  { %v859_v49 = vpop.permute.xlu0 %858 }
 0x8dc   :  { %864 = vst.msk [vmem:[#allocation2 + $0x10] sm:$0xff] %vm862_vm15, %v859_v49 }
 0x8df   :  { %v857_v50 = vpop.permute.xlu0 %856 }
 0x8e0   :  { %863 = vst.msk [vmem:[#allocation2] sm:$0xff] %vm862_vm15, %v857_v50 }
 0x98e   :  { %v1933_v8 = vpop.f32.mrb[12].mxu0 }
 0x98f   :  { %v792_v13 = vpop.f32.mrb[13].mxu0 }
 0x990   :  { %867 = vrot.lane.b32.xlu0 %v792_v13, %s2191_s29  ;;  %v2058_v13 = vpack.c.bf16 %v1041_v12, %v1040_v9  ;;  %v1248_v9 = vld [vmem:[%s2820_s10 + $0xd0] sm:$0xff] }
 0x992   :  { %v1936_v17 = vpop.f32.mrb[14].mxu0 }
 0x993   :  { %877 = vst.msk [vmem:[#allocation2 + $0x18] sm:$0xff] %vm179_vm1, %v1936_v17  ;;  %v802_v21 = vpop.f32.mrb[15].mxu0 }
 0x994   :  { %876 = vst.msk [vmem:[#allocation2 + $0x8] sm:$0xff] %vm179_vm1, %v802_v21  ;;  %869 = vrot.lane.b32.xlu0 %v1933_v8, %s2191_s29  ;;  %v1039_v8 = vld [vmem:[%s2818_s8 + $0x8] sm:$0xff] }
 0x995   :  { %v2054_v10 = vpack.c.bf16 %v1039_v8, %v1038_v7  ;;  %v1230_v7 = vld [vmem:[%s2820_s10 + $0x40] sm:$0xff]  ;;  %v1231_v8 = vld [vmem:[%s2820_s10 + $0x48] sm:$0xff] }
 0x996   :  { %v1939_v24 = vpop.f32.mrb[16].mxu0  ;;  %v2088_v12 = vpack.c.bf16 %v1231_v8, %v1230_v7 }
 0x997   :  { %882 = vrot.lane.b32.xlu1 %v1939_v24, %s2189_s3  ;;  %v812_v29 = vpop.f32.mrb[17].mxu0  ;;  %2055 = vmatprep.subr.bf16.mxu1 %v2054_v10  ;;  %v1127_v24 = vld [vmem:[%s2819_s9] sm:$0xff] }
 0x998   :  { %2057 = vmatpush3.bf16.msra.mxu1 %v2054_v10  ;;  %v2064_v27 = vpack.c.bf16 %v1129_v25, %v1127_v24  ;;  %v1249_v10 = vld [vmem:[%s2820_s10 + $0xd8] sm:$0xff]  ;;  %v1236_v25 = vld [vmem:[%s2820_s10 + $0x70] sm:$0xff] }
 0x999   :  { %2059 = vmatprep.subr.bf16.mxu1 %v2058_v13 }
 0x99a   :  { %v1942_v33 = vpop.f32.mrb[18].mxu0 }
 0x99b   :  { %880 = vrot.lane.b32.xlu1 %v812_v29, %s2189_s3  ;;  %v822_v37 = vpop.f32.mrb[19].mxu0  ;;  %v1134_v29 = vld [vmem:[%s2819_s9 + $0x38] sm:$0xff] }
 0x99c   :  { %2061 = vmatpush3.bf16.msra.mxu1 %v2058_v13  ;;  %v2066_v30 = vpack.c.bf16 %v1134_v29, %v1132_v28  ;;  %v2090_v13 = vpack.c.bf16 %v1249_v10, %v1248_v9 }
 0x99d   :  { %2063 = vmatprep.subr.bf16.mxu1 %v2062_v11  ;;  %v1253_v11 = vld [vmem:[%s2820_s10 + $0xf8] sm:$0xff] }
 0x99e   :  { %v1945_v41 = vpop.f32.mrb[20].mxu0  ;;  %v2098_v24 = vpack.c.bf16 %v1253_v11, %v1252_v23 }
 0x99f   :  { %892 = vrot.lane.b32.xlu1 %v1942_v33, %s2190_s28  ;;  %v832_v45 = vpop.f32.mrb[21].mxu0  ;;  %v2068_v33 = vpack.c.bf16 %v1133_v32, %v1131_v31 }
 0x9a3   :  { %890 = vrot.lane.b32.xlu1 %v822_v37, %s2190_s28 }
 0x9a7   :  { %900 = vrot.lane.b32.xlu1 %v832_v45, %s2191_s29 }
 0x9ab   :  { %902 = vrot.lane.b32.xlu1 %v1945_v41, %s2191_s29  ;;  %v1240_v41 = vld [vmem:[%s2820_s10 + $0x90] sm:$0xff] }
 0x9ac   :  { %v2074_v46 = vpack.c.bf16 %v1241_v42, %v1240_v41 }
 0xa02   :  { %v868_v47 = vpop.permute.xlu0 %867 }
 0xa03   :  { %874 = vst.msk [vmem:[#allocation2] sm:$0xff] %vm873_vm0, %v868_v47  ;;  %v1224_v47 = vld [vmem:[%s2820_s10 + $0x10] sm:$0xff] }
 0xa06   :  { %v870_v48 = vpop.permute.xlu0 %869 }
 0xa07   :  { %875 = vst.msk [vmem:[#allocation2 + $0x10] sm:$0xff] %vm873_vm0, %v870_v48  ;;  %v1225_v48 = vld [vmem:[%s2820_s10 + $0x18] sm:$0xff] }
 0xa09   :  { %v883_v49 = vpop.permute.xlu1 %882 }
 0xa0a   :  { %887 = vst.msk [vmem:[#allocation2 + $0x18] sm:$0xff] %vm851_vm7, %v883_v49  ;;  %v2572_v57 = vld [vmem:[#allocation2] sm:$0xff] }
 0xa0d   :  { %v881_v50 = vpop.permute.xlu1 %880 }
 0xa0e   :  { %886 = vst.msk [vmem:[#allocation2 + $0x8] sm:$0xff] %vm851_vm7, %v881_v50  ;;  %v2578_v59 = vld [vmem:[#allocation2 + $0x10] sm:$0xff]  ;;  %v1242_v50 = vld [vmem:[%s2820_s10 + $0xa0] sm:$0xff] }
 0xa11   :  { %v893_v52 = vpop.permute.xlu1 %892 }
 0xa12   :  { %897 = vst.msk [vmem:[#allocation2 + $0x18] sm:$0xff] %vm862_vm15, %v893_v52  ;;  %v1243_v52 = vld [vmem:[%s2820_s10 + $0xa8] sm:$0xff] }
 0xa15   :  { %v891_v51 = vpop.permute.xlu1 %890 }
 0xa16   :  { %896 = vst.msk [vmem:[#allocation2 + $0x8] sm:$0xff] %vm862_vm15, %v891_v51  ;;  %v2076_v51 = vpack.c.bf16 %v1225_v48, %v1224_v47 }
 0xa19   :  { %v901_v53 = vpop.permute.xlu1 %900 }
 0xa1a   :  { %906 = vst.msk [vmem:[#allocation2 + $0x8] sm:$0xff] %vm873_vm0, %v901_v53 }
 0xa1d   :  { %v903_v55 = vpop.permute.xlu1 %902 }
 0xa1e   :  { %907 = vst.msk [vmem:[#allocation2 + $0x18] sm:$0xff] %vm873_vm0, %v903_v55  ;;  %v2078_v55 = vpack.c.bf16 %v1243_v52, %v1242_v50  ;;  %v1717_v50 = vld [vmem:[%s2823_s13] ss:$0 sm:$0xff] }
 0xa21   :  { %v2569_v56 = vld [vmem:[#allocation2 + $0x8] sm:$0xff] }
 0xa22   :  { %1015 = vmatprep.mubr.f32.mxu0 %v2569_v56 }
 0xa23   :  { %1016 = vmatmul.mubr.f32.vlgmr.msra.gmra.mrb[22].mxu0 %v2572_v57 }
 0xa25   :  { %v2575_v58 = vld [vmem:[#allocation2 + $0x18] sm:$0xff] }
 0xa26   :  { %1020 = vmatprep.mubr.f32.mxu0 %v2575_v58 }
 0xa27   :  { %1021 = vmatmul.mubr.f32.gmra.mrb[24].mxu0 %v2578_v59 }
 0xaf6   :  { %v1804_v60 = vpop.f32.mrb[22].mxu0 }
 0xaf7   :  { %v1805_v61 = vpop.f32.mrb[23].mxu0 }
 0xaf8   :  { %v1806_v63 = vadd.f32 %v1805_v61, %v1804_v60  ;;  %v1226_v60 = vld [vmem:[%s2820_s10 + $0x20] sm:$0xff]  ;;  %v1227_v61 = vld [vmem:[%s2820_s10 + $0x28] sm:$0xff] }
 0xafa   :  { %v1807_v0 = vpop.f32.mrb[24].mxu0  ;;  %v1018_v1 = vadd.f32 %v1806_v63, %v1711_v62  ;;  %v2080_v63 = vpack.c.bf16 %v1227_v61, %v1226_v60 }
 0xafb   :  { %v1808_v2 = vpop.f32.mrb[25].mxu0 }
 0xafc   :  { %v1809_v3 = vadd.f32 %v1808_v2, %v1807_v0  ;;  %v1026_v4 = vsel %vm179_vm1, %v1018_v1, -inf  ;;  %v1229_v2 = vld [vmem:[%s2820_s10 + $0x38] sm:$0xff] }
 0xafd   :  { %1027 = vmax.xlane.f32.xlu1 %v1026_v4  ;;  %v1247_v4 = vld [vmem:[%s2820_s10 + $0xc8] sm:$0xff] }
 0xafe   :  { %v1023_v5 = vadd.f32 %v1809_v3, %v1711_v62  ;;  %v1244_v62 = vld [vmem:[%s2820_s10 + $0xb0] sm:$0xff]  ;;  %v1246_v3 = vld [vmem:[%s2820_s10 + $0xc0] sm:$0xff] }
 0xb00   :  { %v1029_v6 = vsel %vm179_vm1, %v1023_v5, -inf }
 0xb01   :  { %1030 = vmax.xlane.f32.xlu0 %v1029_v6  ;;  %v2086_v6 = vpack.c.bf16 %v1247_v4, %v1246_v3 }
 0xb8a   :  { %v1028_v14 = vpop.xlane.xlu1 %1027 }
 0xb8b   :  { %v1032_v15 = vsub.f32 %v1018_v1, %v1028_v14  ;;  %v1228_v1 = vld [vmem:[%s2820_s10 + $0x30] sm:$0xff] }
 0xb8c   :  { %v1232_v14 = vld [vmem:[%s2820_s10 + $0x50] sm:$0xff] }
 0xb8d   :  { %v1034_v16 = vmul.f32 1.442695, %v1032_v15  ;;  %v1233_v15 = vld [vmem:[%s2820_s10 + $0x58] sm:$0xff] }
 0xb8e   :  { %v1031_v17 = vpop.xlane.xlu0 %1030 }
 0xb8f   :  { %2160 = vpow2.f32 %v1034_v16  ;;  %v1033_v18 = vsub.f32 %v1023_v5, %v1031_v17  ;;  %v2084_v5 = vpack.c.bf16 %v1229_v2, %v1228_v1  ;;  %v1250_v16 = vld [vmem:[%s2820_s10 + $0xe0] sm:$0xff]  ;;  %v1251_v17 = vld [vmem:[%s2820_s10 + $0xe8] sm:$0xff] }
 0xb91   :  { %v1036_v19 = vmul.f32 1.442695, %v1033_v18  ;;  %v2092_v18 = vpack.c.bf16 %v1233_v15, %v1232_v14 }
 0xb93   :  { %2162 = vpow2.f32 %v1036_v19  ;;  %v2094_v19 = vpack.c.bf16 %v1251_v17, %v1250_v16 }
 0xb99   :  { %v2161_v20 = vpop.eup %2160 }
 0xb9a   :  { %1954 = vmatprep.mubr.msk.f32.mxu1 %vm179_vm1, %v2161_v20 }
 0xb9d   :  { %v2163_v21 = vpop.eup %2162 }
 0xb9e   :  { %1955 = vmatmul.mubr.msk.f32.vlgmr.msra.gmra.mrb[6].mxu1 %vm179_vm1, %v2163_v21 }
 0xb9f   :  { %1205 = vmatprep.mubr.f32.mxu1 %v2185_v54  ;;  %2065 = vmatpush1.bf16.msra.mxu1 %v2064_v27  ;;  %v1237_v27 = vld [vmem:[%s2820_s10 + $0x78] sm:$0xff] }
 0xba0   :  { %2067 = vmatprep.subr.bf16.mxu1 %v2066_v30  ;;  %v2100_v28 = vpack.c.bf16 %v1237_v27, %v1236_v25 }
 0xba3   :  { %2069 = vmatpush1.bf16.msra.mxu1 %v2068_v33 }
 0xba4   :  { %2071 = vmatprep.subr.bf16.mxu1 %v2070_v36 }
 0xc71   :  { %v1956_v37 = vpop.f32.mrb[6].mxu1 }
 0xc72   :  { %v1114_v38 = vpop.f32.mrb[7].mxu1 }
 0xc73   :  { %2164 = vrcp.f32 %v1114_v38 }
 0xc74   :  { %2166 = vrcp.f32 %v1956_v37  ;;  %v1342_v37 = vld [vmem:[%s2821_s12] sm:$0xff] }
 0xc7d   :  { %v2165_v43 = vpop.eup %2164 }
 0xc7e   :  { %v1125_v45 = vmul.f32 %v2165_v43, %v2161_v20  ;;  %v2167_v49 = vpop.eup %2166  ;;  %v1234_v20 = vld [vmem:[%s2820_s10 + $0x60] sm:$0xff] }
 0xc7f   :  { %v1126_v53 = vmul.f32 %v2167_v49, %v2163_v21  ;;  %v1235_v21 = vld [vmem:[%s2820_s10 + $0x68] sm:$0xff] }
 0xc80   :  { %1714 = vmatmul.mubr.msk.f32.vlgmr.msra.gmra.mrb[8].mxu1 %vm179_vm1, %v1125_v45  ;;  %v2096_v22 = vpack.c.bf16 %v1235_v21, %v1234_v20 }
 0xc81   :  { %1211 = vmatprep.mubr.f32.mxu1 %v2185_v54  ;;  %2073 = vmatpush3.bf16.msra.mxu1 %v2072_v44  ;;  %v1245_v54 = vld [vmem:[%s2820_s10 + $0xb8] sm:$0xff] }
 0xc82   :  { %2075 = vmatprep.subr.bf16.mxu1 %v2074_v46  ;;  %v2082_v0 = vpack.c.bf16 %v1245_v54, %v1244_v62 }
 0xc84   :  { %1715 = vmatmul.mubr.msk.f32.gmra.mrb[10].mxu1 %vm179_vm1, %v1126_v53 }
 0xc85   :  { %2077 = vmatpush3.bf16.msra.mxu1 %v2076_v51 }
 0xc86   :  { %2079 = vmatprep.subr.bf16.mxu1 %v2078_v55  ;;  %v1722_v55 = vld [vmem:[%s2824_s14] ss:$0 sm:$0xff] }
 0xc89   :  { %2081 = vmatpush3.bf16.msra.mxu1 %v2080_v63 }
 0xc8a   :  { %2083 = vmatprep.subr.bf16.mxu1 %v2082_v0 }
 0xc8d   :  { %2085 = vmatpush3.bf16.msra.mxu1 %v2084_v5 }
 0xc8e   :  { %2087 = vmatprep.subr.bf16.mxu1 %v2086_v6 }
 0xc91   :  { %2089 = vmatpush3.bf16.msra.mxu1 %v2088_v12 }
 0xc92   :  { %2091 = vmatprep.subr.bf16.mxu1 %v2090_v13  ;;  %v1475_v13 = vstv %s2825_s15 }
 0xc95   :  { %2093 = vmatpush3.bf16.msra.mxu1 %v2092_v18 }
 0xc96   :  { %2095 = vmatprep.subr.bf16.mxu1 %v2094_v19 }
 0xc99   :  { %2097 = vmatpush3.bf16.msra.mxu1 %v2096_v22 }
 0xc9a   :  { %2099 = vmatprep.subr.bf16.mxu1 %v2098_v24 }
 0xc9d   :  { %2101 = vmatpush3.bf16.msra.mxu1 %v2100_v28 }
 0xd53   :  { %v1207_v29 = vpop.f32.mrb[8].mxu1 }
 0xd54   :  { %v1209_v30 = vpop.f32.mrb[9].mxu1  ;;  %v1218_v32 = vmul.f32 %v1207_v29, %v2572_v57  ;;  %v1344_v57 = vld [vmem:[%s2821_s12 + $0x10] sm:$0xff] }
 0xd55   :  { %v1219_v31 = vmul.f32 %v1209_v30, %v2569_v56  ;;  %v1343_v56 = vld [vmem:[%s2821_s12 + $0x8] sm:$0xff] }
 0xd56   :  { %v2102_v38 = vpack.c.bf16 %v1343_v56, %v1342_v37 }
 0xd57   :  { %v1213_v33 = vpop.f32.mrb[10].mxu1  ;;  %1325 = vmatprep.mubr.f32.mxu1 %v1219_v31 }
 0xd58   :  { %v1215_v34 = vpop.f32.mrb[11].mxu1  ;;  %1326 = vmatmul.mubr.f32.vlgmr.msra.gmra.mrb[12].mxu1 %v1218_v32  ;;  %v1220_v36 = vmul.f32 %v1213_v33, %v2578_v59  ;;  %2103 = vmatprep.subr.bf16.mxu0 %v2102_v38 }
 0xd59   :  { %v1221_v35 = vmul.f32 %v1215_v34, %v2575_v58  ;;  %2105 = vmatpush3.bf16.msra.mxu0 %v2102_v38  ;;  %v1345_v58 = vld [vmem:[%s2821_s12 + $0x18] sm:$0xff] }
 0xd5a   :  { %v2106_v59 = vpack.c.bf16 %v1345_v58, %v1344_v57 }
 0xd5b   :  { %1330 = vmatprep.mubr.f32.mxu1 %v1221_v35 }
 0xd5c   :  { %1331 = vmatmul.mubr.f32.gmra.mrb[14].mxu1 %v1220_v36  ;;  %2107 = vmatprep.subr.bf16.mxu0 %v2106_v59 }
 0xd5d   :  { %2109 = vmatpush3.bf16.msra.mxu0 %v2106_v59  ;;  %v1538_v59 = vld [vmem:[%s2826_s16] sm:$0xff] }
 0xe2b   :  { %v1848_v39 = vpop.f32.mrb[12].mxu1 }
 0xe2c   :  { %v1849_v41 = vpop.f32.mrb[13].mxu1 }
 0xe2d   :  { %v1850_v42 = vadd.f32 %v1849_v41, %v1848_v39  ;;  %v1539_v39 = vld [vmem:[%s2826_s16 + $0x8] sm:$0xff]  ;;  %v1540_v41 = vld [vmem:[%s2826_s16 + $0x10] sm:$0xff] }
 0xe2f   :  { %v2743_v43 = vadd.f32 %v1850_v42, %v1716_v40  ;;  %v1851_v44 = vpop.f32.mrb[14].mxu1 }
 0xe30   :  { %v1852_v45 = vpop.f32.mrb[15].mxu1 }
 0xe31   :  { %v1853_v46 = vadd.f32 %v1852_v45, %v1851_v44  ;;  %1338 = vrot.lane.b32.xlu0 %v2743_v43, %s2191_s29  ;;  %1965 = vmatprep.mubr.msk.f32.mxu0 %vm179_vm1, %v2743_v43 }
 0xe33   :  { %v2749_v47 = vadd.f32 %v1853_v46, %v1716_v40  ;;  %v2110_v40 = vpack.c.bf16 %v1539_v39, %v1538_v59 }
 0xe35   :  { %1340 = vrot.lane.b32.xlu1 %v2749_v47, %s2191_s29  ;;  %1966 = vmatmul.mubr.msk.f32.vlgmr.msra.gmra.mrb[26].mxu0 %vm179_vm1, %v2749_v47 }
 0xe36   :  { %2111 = vmatprep.subr.bf16.mxu0 %v2110_v40 }
 0xe37   :  { %2113 = vmatpush3.bf16.msra.mxu0 %v2110_v40 }
 0xea3   :  { %v1339_v48 = vpop.permute.xlu0 %1338 }
 0xea4   :  { %1968 = vmatprep.mubr.msk.f32.mxu0 %vm179_vm1, %v1339_v48 }
 0xea7   :  { %v1341_v49 = vpop.permute.xlu1 %1340 }
 0xea8   :  { %1969 = vmatmul.mubr.msk.f32.gmra.mrb[28].mxu0 %vm179_vm1, %v1341_v49 }
 0xf08   :  { %v1967_v52 = vpop.f32.mrb[26].mxu0 }
 0xf09   :  { %v1427_v51 = vpop.f32.mrb[27].mxu0  ;;  %v1433_v54 = vadd.f32 %v1967_v52, %v1717_v50 }
 0xf0a   :  { %v1428_v53 = vadd.f32 %v1717_v50, %v1427_v51 }
 0xf0b   :  { %v1447_v4 = vmax.f32 %v1433_v54, 0.0 }
 0xf0c   :  { %v1446_v60 = vmax.f32 %v1428_v53, 0.0 }
 0xf0d   :  { %v1458_v10 = vmul.f32 %v1722_v55, %v1447_v4 }
 0xf0e   :  { %v1457_v61 = vmul.f32 %v1722_v55, %v1446_v60 }
 0xf0f   :  { %v1465_v12 = vsel %vm1461_vm2, %v1458_v10, 0.0 }
 0xf10   :  { %v1462_v62 = vsel %vm1461_vm2, %v1457_v61, 0.0 }
 0xf11   :  { %1463 = vadd.xlane.f32.xlu1 %v1462_v62  ;;  %v1723_v62 = vld [vmem:[%s2827_s17] ss:$0 sm:$0xff] }
 0xf7b   :  { %v1970_v63 = vpop.f32.mrb[28].mxu0 }
 0xf7c   :  { %v1443_v0 = vadd.f32 %v1970_v63, %v1717_v50  ;;  %v1437_v1 = vpop.f32.mrb[29].mxu0 }
 0xf7d   :  { %v1438_v2 = vadd.f32 %v1717_v50, %v1437_v1 }
 0xf7e   :  { %v1449_v3 = vmax.f32 %v1443_v0, 0.0 }
 0xf7f   :  { %v1448_v5 = vmax.f32 %v1438_v2, 0.0 }
 0xf80   :  { %v1460_v6 = vmul.f32 %v1722_v55, %v1449_v3 }
 0xf81   :  { %v1459_v7 = vmul.f32 %v1722_v55, %v1448_v5 }
 0xf82   :  { %v1471_v8 = vsel %vm1461_vm2, %v1460_v6, 0.0 }
 0xf83   :  { %1472 = vadd.xlane.f32.xlu1 %v1471_v8  ;;  %v1468_v9 = vsel %vm1461_vm2, %v1459_v7, 0.0 }
 0xf84   :  { %1469 = vadd.xlane.f32.xlu0 %v1468_v9 }
 0xf88   :  { %1466 = vadd.xlane.f32.xlu0 %v1465_v12 }
 0xf9e   :  { %v1464_v14 = vpop.xlane.xlu1 %1463 }
 0xf9f   :  { %v1476_v16 = vadd.f32 %v1475_v13, %v1464_v14 }
0x1010   :  { %v1473_v18 = vpop.xlane.xlu1 %1472 }
0x1011   :  { %v1470_v15 = vpop.xlane.xlu0 %1469  ;;  %v1479_v22 = vadd.f32 %v1475_v13, %v1473_v18 }
0x1012   :  { %v1478_v17 = vadd.f32 %v1475_v13, %v1470_v15 }
0x1014   :  { %v1481_v19 = vsel %vm1480_vm3, %v1476_v16, %v1478_v17 }
0x1015   :  { %v1467_v20 = vpop.xlane.xlu0 %1466  ;;  %v1484_v21 = vsel %vm1483_vm4, %v1481_v19, -inf }
0x1016   :  { %v1477_v23 = vadd.f32 %v1475_v13, %v1467_v20  ;;  %1485 = vmax.xlane.f32.xlu0 %v1484_v21 }
0x1018   :  { %v1482_v11 = vsel %vm1480_vm3, %v1477_v23, %v1479_v22 }
0x1019   :  { %v1487_v24 = vsel %vm1483_vm4, %v1482_v11, -inf }
0x101a   :  { %1488 = vmax.xlane.f32.xlu1 %v1487_v24 }
0x10a3   :  { %v1486_v25 = vpop.xlane.xlu0 %1485 }
0x10a4   :  { %v1490_v27 = vsub.f32 %v1481_v19, %v1486_v25 }
0x10a6   :  { %v1492_v28 = vmul.f32 1.442695, %v1490_v27 }
0x10a7   :  { %v1489_v29 = vpop.xlane.xlu1 %1488 }
0x10a8   :  { %2168 = vpow2.f32 %v1492_v28  ;;  %v1491_v30 = vsub.f32 %v1482_v11, %v1489_v29 }
0x10aa   :  { %v1494_v31 = vmul.f32 1.442695, %v1491_v30 }
0x10ac   :  { %2170 = vpow2.f32 %v1494_v31 }
0x10b2   :  { %v2169_v32 = vpop.eup %2168 }
0x10b3   :  { %v1496_v33 = vsel %vm1483_vm4, %v2169_v32, 0.0 }
0x10b4   :  { %1497 = vadd.xlane.f32.xlu0 %v1496_v33 }
0x10b6   :  { %v2171_v34 = vpop.eup %2170 }
0x10b7   :  { %v1499_v35 = vsel %vm1483_vm4, %v2171_v34, 0.0 }
0x10b8   :  { %1500 = vadd.xlane.f32.xlu1 %v1499_v35 }
0x1141   :  { %v1498_v36 = vpop.xlane.xlu0 %1497 }
0x1142   :  { %2172 = vrcp.f32 %v1498_v36 }
0x1145   :  { %v1501_v37 = vpop.xlane.xlu1 %1500 }
0x1146   :  { %2174 = vrcp.f32 %v1501_v37 }
0x114c   :  { %v2173_v56 = vpop.eup %2172 }
0x114d   :  { %v1504_v38 = vmul.f32 %v2173_v56, %v2169_v32 }
0x114f   :  { %1519 = vperm.xlu0 %2149, %v1504_v38  }
0x1150   :  { %v2175_v57 = vpop.eup %2174 }
0x1151   :  { %v1505_v58 = vmul.f32 %v2175_v57, %v2171_v34 }
0x1153   :  { %1523 = vperm.xlu1 %2150, %v1505_v58  }
0x1157   :  { %2151 = vset.pattern.permute.xlu1 %v2184_v26  ;;  %v1541_v26 = vld [vmem:[%s2826_s16 + $0x18] sm:$0xff] }
0x1158   :  { %1508 = vperm.xlu1 %2151, %v1504_v38   ;;  %v2114_v42 = vpack.c.bf16 %v1541_v26, %v1540_v41 }
0x115a   :  { %2115 = vmatprep.subr.bf16.mxu0 %v2114_v42 }
0x115b   :  { %2117 = vmatpush3.bf16.msra.mxu0 %v2114_v42 }
0x115c   :  { %1513 = vperm.xlu1 %2151, %v1505_v58  }
0x11ce   :  { %v1520_v44 = vpop.permute.xlu0 %1519 }
0x11cf   :  { %v1526_v45 = vmul.f32 %v1520_v44, %v2743_v43 }
0x11d1   :  { %1530 = vrot.lane.b32.xlu1 %v1526_v45, %s2191_s29 }
0x11d2   :  { %v1524_v46 = vpop.permute.xlu1 %1523 }
0x11d3   :  { %v1527_v48 = vmul.f32 %v1524_v46, %v2749_v47 }
0x11d5   :  { %1532 = vrot.lane.b32.xlu1 %v1527_v48, %s2191_s29 }
0x11d7   :  { %v1509_v49 = vpop.permute.xlu1 %1508 }
0x11d8   :  { %v1516_v52 = vmul.f32 %v1509_v49, %v2743_v43 }
0x11db   :  { %v1514_v50 = vpop.permute.xlu1 %1513 }
0x11dc   :  { %v1517_v55 = vmul.f32 %v1514_v50, %v2749_v47 }
0x1243   :  { %v1531_v51 = vpop.permute.xlu1 %1530 }
0x1244   :  { %v1536_v53 = vadd.f32 %v1531_v51, %v1516_v52 }
0x1246   :  { %1979 = vmatprep.mubr.msk.f32.mxu0 %vm179_vm1, %v1536_v53 }
0x1247   :  { %v1533_v60 = vpop.permute.xlu1 %1532 }
0x1248   :  { %v1537_v61 = vadd.f32 %v1533_v60, %v1517_v55 }
0x124a   :  { %1980 = vmatmul.mubr.msk.f32.vlgmr.msra.gmra.mrb[30].mxu0 %vm179_vm1, %v1537_v61 }
0x131d   :  { %v1981_v54 = vpop.f32.mrb[30].mxu0 }
0x131e   :  { %v1627_v63 = vadd.f32 %v1981_v54, %v1723_v62  ;;  %v1621_v0 = vpop.f32.mrb[31].mxu0 }
0x131f   :  { %v1622_v1 = vadd.f32 %v1723_v62, %v1621_v0 }
0x1320   :  { %v1633_v43 = vsel %vm1461_vm2, %v1627_v63, -inf }
0x1321   :  { %1634 = vmax.xlane.f32.xlu0 %v1633_v43  ;;  %v1630_v2 = vsel %vm1461_vm2, %v1622_v1, -inf }
0x1322   :  { %1631 = vmax.xlane.f32.xlu1 %v1630_v2 }
0x13ae   :  { %v1635_v47 = vpop.xlane.xlu0 %1634 }
0x13af   :  { %v1637_v3 = vsub.f32 %v1627_v63, %v1635_v47  ;;  %v1632_v4 = vpop.xlane.xlu1 %1631 }
0x13b0   :  { %v1636_v5 = vsub.f32 %v1622_v1, %v1632_v4 }
0x13b1   :  { %v1640_v6 = vmul.f32 1.442695, %v1637_v3 }
0x13b2   :  { %v1638_v7 = vmul.f32 1.442695, %v1636_v5 }
0x13b3   :  { %2176 = vpow2.f32 %v1640_v6 }
0x13b4   :  { %2178 = vpow2.f32 %v1638_v7 }
0x13bd   :  { %v2177_v8 = vpop.eup %2176 }
0x13be   :  { %v2179_v9 = vpop.eup %2178  ;;  %v1645_v10 = vsel %vm1461_vm2, %v2177_v8, 0.0 }
0x13bf   :  { %1646 = vadd.xlane.f32.xlu0 %v1645_v10  ;;  %v1642_v12 = vsel %vm1461_vm2, %v2179_v9, 0.0 }
0x13c0   :  { %1643 = vadd.xlane.f32.xlu1 %v1642_v12 }
0x144c   :  { %v1647_v13 = vpop.xlane.xlu0 %1646 }
0x144d   :  { %2180 = vlog2.f32 %v1647_v13  ;;  %v1644_v14 = vpop.xlane.xlu1 %1643 }
0x144e   :  { %2182 = vlog2.f32 %v1644_v14 }
0x1457   :  { %v2181_v15 = vpop.eup %2180 }
0x1458   :  { %v2183_v16 = vpop.eup %2182  ;;  %v1651_v17 = vmul.f32 0.6931472, %v2181_v15 }
0x1459   :  { %v1649_v18 = vmul.f32 0.6931472, %v2183_v16 }
0x145a   :  { %v1653_v19 = vsub.f32 %v1637_v3, %v1651_v17 }
0x145b   :  { %v1652_v20 = vsub.f32 %v1636_v5, %v1649_v18 }
0x145c   :  { %1655 = vst.msk [vmem:[%s2828_s18 + $0x8] sm:$0xff] %vm1461_vm2, %v1653_v19 }
0x145d   :  { %1654 = vst.msk [vmem:[%s2828_s18] sm:$0xff] %vm1461_vm2, %v1652_v20 }

</bundles_post_ra>
